<compile_context>
chip_gen: v7x
topology: tpu7x:2x2x1
jax: 0.10.0
libtpu: 0.0.40
codegen_flags: <defaults>
</compile_context>

<pallas_src>
import functools

import jax
import jax.numpy as jnp
from jax import lax
from jax.experimental import pallas as pl
from jax.experimental.pallas import tpu as pltpu


def mlp_kernel(x_ref, w1_ref, b1_ref, w2_ref, b2_ref, w3_ref, b3_ref, o_ref):
    """Fused MLP on a transposed activation layout:
         o^T = W3 @ relu(W2 @ relu(W1 @ x^T + b1) + b2) + b3
    x arrives in natural (bb, in_dim) layout; the first dot_general contracts
    the in_dim axes of W1 (out,in) and x (bb,in) directly, so no transpose of x
    is ever materialized.  All accumulation / bias / ReLU in f32."""
    # Layer 1: contract in_dim -> (h1, bb); batch lives on lanes from here on.
    h = lax.dot_general(
        w1_ref[...], x_ref[...],
        dimension_numbers=(((1,), (1,)), ((), ())),
        preferred_element_type=jnp.float32)
    h = jnp.maximum(h + b1_ref[...], 0.0)
    # Layer 2: (h2, h1) @ (h1, bb) -> (h2, bb)
    h = jnp.dot(w2_ref[...], h, preferred_element_type=jnp.float32)
    h = jnp.maximum(h + b2_ref[...], 0.0)
    # Output layer: (1, h2) @ (h2, bb) -> (1, bb) -- lane-dense along batch.
    out = jnp.dot(w3_ref[...], h, preferred_element_type=jnp.float32)
    o_ref[...] = (out + b3_ref[0]).astype(o_ref.dtype)   # scalar bias from SMEM


def _num_batch_tiles():
    """2 TensorCores per chip on v7x, 1 on v5e/v6e."""
    try:
        kind = jax.devices()[0].device_kind.lower()
    except Exception:
        kind = ""
    return 2 if "v7" in kind else 1


def _choose_block_b(batch, num_tiles, max_bb=4096):
    """Whole batch in one step when possible (single-TC chips); otherwise the
    smallest 128-multiple tile that yields `num_tiles` steps (v7x megacore)."""
    if num_tiles <= 1 and batch <= max_bb:
        return batch
    bb = -(-batch // num_tiles)               # ceil div
    bb = min(bb, max_bb)
    bb = max(128, ((bb + 127) // 128) * 128)  # lane dim must be a /128 multiple when tiled
    return batch if bb >= batch else bb


@functools.partial(jax.jit, static_argnames=("block_b",))
def _mlp_pallas(x, w1, b1c, w2, b2c, w3, b3c, *, block_b):
    batch, in_dim = x.shape
    h1, h2, out_dim = w1.shape[0], w2.shape[0], w3.shape[0]
    bb = block_b
    grid = (pl.cdiv(batch, bb),)

    # Scheduler hint: tiny kernel, don't let XLA assume it's expensive.
    flops = 2 * batch * (in_dim * h1 + h1 * h2 + h2 * out_dim)
    bytes_accessed = 4 * (batch * in_dim + batch * out_dim
                          + h1 * in_dim + h2 * h1 + out_dim * h2
                          + h1 + h2 + out_dim)

    # Tight scoped-VMEM budget: double-buffered x/out tiles + resident f32
    # weights/biases + f32 activation temporaries, with ~4x headroom.  Stays a
    # few MiB -- far under v7x's 64 MiB physical (and v5e/v6e's 128 MiB).
    est = (2 * bb * in_dim * 4                 # x tile, double-buffered
           + 2 * out_dim * bb * 4              # output tile, double-buffered
           + 2 * (h1 * in_dim + h2 * h1 + out_dim * h2 + h1 + h2) * 4  # weights/biases
           + 2 * (h1 + h2) * bb * 4)           # activation temporaries
    vmem_limit = int(min(32 * 1024 * 1024, max(4 * 1024 * 1024, 4 * est)))

    out_t = pl.pallas_call(
        mlp_kernel,
        out_shape=jax.ShapeDtypeStruct((out_dim, batch), jnp.float32),
        grid=grid,
        in_specs=[
            # x tile in natural (batch, in_dim) layout -- no wrapper transpose.
            pl.BlockSpec((bb, in_dim), lambda i: (i, 0)),
            # weights / column-biases resident across the batch grid
            pl.BlockSpec((h1, in_dim), lambda i: (0, 0)),
            pl.BlockSpec((h1, 1), lambda i: (0, 0)),
            pl.BlockSpec((h2, h1), lambda i: (0, 0)),
            pl.BlockSpec((h2, 1), lambda i: (0, 0)),
            pl.BlockSpec((out_dim, h2), lambda i: (0, 0)),
            # scalar output bias in SMEM
            pl.BlockSpec(memory_space=pltpu.MemorySpace.SMEM),
        ],
        out_specs=pl.BlockSpec((out_dim, bb), lambda i: (0, i)),
        compiler_params=pltpu.CompilerParams(
            dimension_semantics=("parallel",),   # batch tiles shard across TCs (v7x)
            vmem_limit_bytes=vmem_limit,
        ),
        cost_estimate=pl.CostEstimate(
            flops=flops, transcendentals=0, bytes_accessed=bytes_accessed),
    )(x, w1, b1c, w2, b2c, w3, b3c)

    return out_t.T                               # (out_dim, batch) -> (batch, out_dim)


def prepare_params(w1, b1, w2, b2, w3, b3):
    """One-time param prep, hoisted out of the per-call forward path.
    Weights stay in PyTorch (out, in) layout and f32 (exact torch parity);
    hidden-layer biases become (h, 1) columns so they broadcast against the
    (h, bb) transposed activations; the scalar output bias stays (1,)."""
    return (w1, b1.reshape(-1, 1), w2, b2.reshape(-1, 1), w3, b3.reshape(-1))


def mlp_forward(x, params, block_b=None):
    """Fused MLP forward.  `params` from prepare_params()."""
    if block_b is None:
        block_b = _choose_block_b(x.shape[0], _num_batch_tiles())
    return _mlp_pallas(x, *params, block_b=int(block_b))


def init_linear(key, fan_in, fan_out, dtype=jnp.float32):
    """PyTorch-style nn.Linear init: U(-1/sqrt(fan_in), 1/sqrt(fan_in)).
    Returns w of shape (fan_out, fan_in) and b of shape (fan_out,)."""
    kw, kb = jax.random.split(key)
    bound = 1.0 / (fan_in ** 0.5)
    w = jax.random.uniform(kw, (fan_out, fan_in), dtype, minval=-bound, maxval=bound)
    b = jax.random.uniform(kb, (fan_out,), dtype, minval=-bound, maxval=bound)
    return w, b


def ref_forward(x, w1, b1, w2, b2, w3, b3):
    """Pure-JAX f32 reference (matches the PyTorch f32 module)."""
    h = jnp.maximum(x @ w1.T + b1, 0.0)
    h = jnp.maximum(h @ w2.T + b2, 0.0)
    return h @ w3.T + b3


if __name__ == "__main__":
    # Shapes consistent with MLPModel(input_dim=32, hidden_sizes=[64, 32]).
    batch = 1024
    input_dim = 32
    hidden_sizes = [64, 32]

    key = jax.random.PRNGKey(0)
    kx, k1, k2, k3 = jax.random.split(key, 4)

    x = jax.random.normal(kx, (batch, input_dim), jnp.float32)
    w1, b1 = init_linear(k1, input_dim, hidden_sizes[0])
    w2, b2 = init_linear(k2, hidden_sizes[0], hidden_sizes[1])
    w3, b3 = init_linear(k3, hidden_sizes[1], 1)

    params = prepare_params(w1, b1, w2, b2, w3, b3)
    out = jax.block_until_ready(mlp_forward(x, params))

    ref = ref_forward(x, w1, b1, w2, b2, w3, b3)
    assert out.shape == (batch, 1), out.shape
    max_err = float(jnp.max(jnp.abs(out - ref)))
    assert jnp.allclose(out, ref, atol=1e-2, rtol=1e-2), f"mismatch vs reference: {max_err}"

    print("KERNEL_OK")
</pallas_src>

<mosaic_0001>
module attributes {stable_mosaic.version = 11 : i64} {
  func.func @mlp_kernel(%arg0: i32, %arg1: memref<1024x32xf32, #tpu.memory_space<vmem>>, %arg2: memref<64x32xf32, #tpu.memory_space<vmem>>, %arg3: memref<64x1xf32, #tpu.memory_space<vmem>>, %arg4: memref<32x64xf32, #tpu.memory_space<vmem>>, %arg5: memref<32x1xf32, #tpu.memory_space<vmem>>, %arg6: memref<1x32xf32, #tpu.memory_space<vmem>>, %arg7: memref<1xf32, #tpu.memory_space<smem>>, %arg8: memref<1x1024xf32, #tpu.memory_space<vmem>>) attributes {dimension_semantics = [#tpu.dimension_semantics<parallel>], iteration_bounds = array<i64: 1>, scalar_prefetch = 0 : i64, scratch_operands = 0 : i64, tpu.core_type = #tpu.core_type<tc>, window_params = [{transform_indices = @transform_0, window_bounds = array<i64: 1024, 32>}, {pipeline_mode = #tpu.pipeline_mode<synchronous>, transform_indices = @transform_1, window_bounds = array<i64: 64, 32>}, {pipeline_mode = #tpu.pipeline_mode<synchronous>, transform_indices = @transform_2, window_bounds = array<i64: 64, 1>}, {pipeline_mode = #tpu.pipeline_mode<synchronous>, transform_indices = @transform_3, window_bounds = array<i64: 32, 64>}, {pipeline_mode = #tpu.pipeline_mode<synchronous>, transform_indices = @transform_4, window_bounds = array<i64: 32, 1>}, {pipeline_mode = #tpu.pipeline_mode<synchronous>, transform_indices = @transform_5, window_bounds = array<i64: 1, 32>}, {transform_indices = @transform_6, window_bounds = array<i64: 1>}, {transform_indices = @transform_7, window_bounds = array<i64: 1, 1024>}]} {
    %c0 = arith.constant 0 : index
    %c0_0 = arith.constant 0 : index
    %0 = vector.load %arg2[%c0, %c0_0] : memref<64x32xf32, #tpu.memory_space<vmem>>, vector<64x32xf32>
    %c0_1 = arith.constant 0 : index
    %c0_2 = arith.constant 0 : index
    %1 = vector.load %arg1[%c0_1, %c0_2] : memref<1024x32xf32, #tpu.memory_space<vmem>>, vector<1024x32xf32>
    %cst = arith.constant dense<0.000000e+00> : vector<64x1024xf32>
    %2 = tpu.matmul %0, %1, %cst {dimension_numbers = #tpu.dot_dimension_numbers<[1], [1], [0], [0], [0, 0, 1, 0], [], []>} : vector<64x32xf32>, vector<1024x32xf32>, vector<64x1024xf32> -> vector<64x1024xf32>
    %c0_3 = arith.constant 0 : index
    %c0_4 = arith.constant 0 : index
    %3 = vector.load %arg3[%c0_3, %c0_4] : memref<64x1xf32, #tpu.memory_space<vmem>>, vector<64x1xf32>
    %4 = vector.broadcast %3 : vector<64x1xf32> to vector<64x1024xf32>
    %5 = arith.addf %2, %4 : vector<64x1024xf32>
    %cst_5 = arith.constant 0.000000e+00 : f32
    %6 = vector.broadcast %cst_5 : f32 to vector<64x1024xf32>
    %7 = arith.maximumf %5, %6 : vector<64x1024xf32>
    %c0_6 = arith.constant 0 : index
    %c0_7 = arith.constant 0 : index
    %8 = vector.load %arg4[%c0_6, %c0_7] : memref<32x64xf32, #tpu.memory_space<vmem>>, vector<32x64xf32>
    %cst_8 = arith.constant dense<0.000000e+00> : vector<32x1024xf32>
    %9 = tpu.matmul %8, %7, %cst_8 {dimension_numbers = #tpu.dot_dimension_numbers<[1], [0], [0], [1], [0, 0, 1, 1], [], []>} : vector<32x64xf32>, vector<64x1024xf32>, vector<32x1024xf32> -> vector<32x1024xf32>
    %c0_9 = arith.constant 0 : index
    %c0_10 = arith.constant 0 : index
    %10 = vector.load %arg5[%c0_9, %c0_10] : memref<32x1xf32, #tpu.memory_space<vmem>>, vector<32x1xf32>
    %11 = vector.broadcast %10 : vector<32x1xf32> to vector<32x1024xf32>
    %12 = arith.addf %9, %11 : vector<32x1024xf32>
    %cst_11 = arith.constant 0.000000e+00 : f32
    %13 = vector.broadcast %cst_11 : f32 to vector<32x1024xf32>
    %14 = arith.maximumf %12, %13 : vector<32x1024xf32>
    %c0_12 = arith.constant 0 : index
    %c0_13 = arith.constant 0 : index
    %15 = vector.load %arg6[%c0_12, %c0_13] : memref<1x32xf32, #tpu.memory_space<vmem>>, vector<1x32xf32>
    %cst_14 = arith.constant dense<0.000000e+00> : vector<1x1024xf32>
    %16 = tpu.matmul %15, %14, %cst_14 {dimension_numbers = #tpu.dot_dimension_numbers<[1], [0], [0], [1], [0, 0, 1, 1], [], []>} : vector<1x32xf32>, vector<32x1024xf32>, vector<1x1024xf32> -> vector<1x1024xf32>
    %c0_15 = arith.constant 0 : index
    %17 = memref.load %arg7[%c0_15] : memref<1xf32, #tpu.memory_space<smem>>
    %18 = vector.broadcast %17 : f32 to vector<1x1024xf32>
    %19 = arith.addf %16, %18 : vector<1x1024xf32>
    %c0_16 = arith.constant 0 : index
    %c0_17 = arith.constant 0 : index
    %20 = vector.load %arg8[%c0_16, %c0_17] : memref<1x1024xf32, #tpu.memory_space<vmem>>, vector<1x1024xf32>
    tpu.vector_store %arg8[%c0_16, %c0_17], %19 {strides = array<i32>} : memref<1x1024xf32, #tpu.memory_space<vmem>>, vector<1x1024xf32>,
    return
  }
  func.func @transform_0(%arg0: i32) -> (i32, i32) {
    %c0_i32 = arith.constant 0 : i32
    %c0_i32_0 = arith.constant 0 : i32
    return %arg0, %c0_i32 : i32, i32
  }
  func.func @transform_1(%arg0: i32) -> (i32, i32) {
    %c0_i32 = arith.constant 0 : i32
    %c0_i32_0 = arith.constant 0 : i32
    %c0_i32_1 = arith.constant 0 : i32
    return %c0_i32, %c0_i32_0 : i32, i32
  }
  func.func @transform_2(%arg0: i32) -> (i32, i32) {
    %c0_i32 = arith.constant 0 : i32
    %c0_i32_0 = arith.constant 0 : i32
    %c0_i32_1 = arith.constant 0 : i32
    return %c0_i32, %c0_i32_0 : i32, i32
  }
  func.func @transform_3(%arg0: i32) -> (i32, i32) {
    %c0_i32 = arith.constant 0 : i32
    %c0_i32_0 = arith.constant 0 : i32
    %c0_i32_1 = arith.constant 0 : i32
    return %c0_i32, %c0_i32_0 : i32, i32
  }
  func.func @transform_4(%arg0: i32) -> (i32, i32) {
    %c0_i32 = arith.constant 0 : i32
    %c0_i32_0 = arith.constant 0 : i32
    %c0_i32_1 = arith.constant 0 : i32
    return %c0_i32, %c0_i32_0 : i32, i32
  }
  func.func @transform_5(%arg0: i32) -> (i32, i32) {
    %c0_i32 = arith.constant 0 : i32
    %c0_i32_0 = arith.constant 0 : i32
    %c0_i32_1 = arith.constant 0 : i32
    return %c0_i32, %c0_i32_0 : i32, i32
  }
  func.func @transform_6(%arg0: i32) -> i32 {
    %c0_i32 = arith.constant 0 : i32
    %c0_i32_0 = arith.constant 0 : i32
    return %c0_i32 : i32
  }
  func.func @transform_7(%arg0: i32) -> (i32, i32) {
    %c0_i32 = arith.constant 0 : i32
    %c0_i32_0 = arith.constant 0 : i32
    return %c0_i32, %arg0 : i32, i32
  }
}

</mosaic_0001>

<bundles_post_ra>
// kernel: _mlp_pallas.1
= control target key start
LH: loop header
LB: loop body
LE: loop exit
PB: predicated region body
PF: predicated region fallthrough
CT: control target
= control target key end

     0   :  { %vm212_vm0 = vcmask 261120   ;;  %v2619_v52 = vmov 0   ;;  %s3605_s0 = inlined_call_operand.vmem [shape: f32[1024,32], index: 0, kind: input, shape index: {}]   ;;  %s3606_s1 = inlined_call_operand.vmem [shape: f32[64,32], index: 1, kind: input, shape index: {}]   ;;  %s3607_s2 = inlined_call_operand.vmem [shape: f32[64,1], index: 2, kind: input, shape index: {}]   ;;  %s3608_s3 = inlined_call_operand.vmem [shape: f32[32,64], index: 3, kind: input, shape index: {}]   ;;  %s3609_s4 = inlined_call_operand.vmem [shape: f32[32,1], index: 4, kind: input, shape index: {}]   ;;  %s3610_s5 = inlined_call_operand.vmem [shape: f32[1,32], index: 5, kind: input, shape index: {}]   ;;  %s3611_s6 = inlined_call_operand.<no memory space> [shape: f32[1], index: 6, kind: input, shape index: {}]   ;;  %s3612_s7 = inlined_call_operand.hbm [shape: f32[1,1024], index: 7, kind: output, shape index: {}]  }
   0x1   :  { %v52_v0 = vld [vmem:[%s3605_s0 + $0x80] sm:$0xff]  ;;  %v53_v1 = vld [vmem:[%s3605_s0 + $0x88] sm:$0xff]  ;;  %vm2674_vm1 = vmpackc.low %vm212_vm0, %vm212_vm0  ;;  %2593 = vset.pattern.permute.xlu0 %v2619_v52  ;;  %2594 = vset.pattern.permute.xlu1 %v2619_v52 }
   0x2   :  { %v84_v2 = vld [vmem:[%s3605_s0 + $0x180] sm:$0xff]  ;;  %v2301_v3 = vpack.c.bf16 %v53_v1, %v52_v0  ;;  %v85_v5 = vld [vmem:[%s3605_s0 + $0x188] sm:$0xff]  ;;  %v54_v13 = vld [vmem:[%s3605_s0 + $0x90] sm:$0xff] }
   0x3   :  { %v36_v6 = vld [vmem:[%s3605_s0] sm:$0xff]  ;;  %v2349_v7 = vpack.c.bf16 %v85_v5, %v84_v2  ;;  %v37_v8 = vld [vmem:[%s3605_s0 + $0x8] sm:$0xff]  ;;  %v55_v14 = vld [vmem:[%s3605_s0 + $0x98] sm:$0xff] }
   0x4   :  { %v68_v9 = vld [vmem:[%s3605_s0 + $0x100] sm:$0xff]  ;;  %v69_v10 = vld [vmem:[%s3605_s0 + $0x108] sm:$0xff]  ;;  %2303 = vmatprep.subr.msk.bf16.mxu0 %vm2674_vm1, %v2301_v3  ;;  %v2304_v11 = vpack.c.bf16 %v37_v8, %v36_v6  ;;  %v86_v15 = vld [vmem:[%s3605_s0 + $0x190] sm:$0xff]  ;;  %v2307_v16 = vpack.c.bf16 %v55_v14, %v54_v13 }
   0x5   :  { %v2352_v12 = vpack.c.bf16 %v69_v10, %v68_v9  ;;  %2351 = vmatprep.subr.msk.bf16.mxu1 %vm2674_vm1, %v2349_v7  ;;  %v87_v17 = vld [vmem:[%s3605_s0 + $0x198] sm:$0xff]  ;;  %v38_v19 = vld [vmem:[%s3605_s0 + $0x10] sm:$0xff]  ;;  %v56_v23 = vld [vmem:[%s3605_s0 + $0xa0] sm:$0xff] }
   0x6   :  { %2306 = vmatpush3.bf16.xpose.msk.msra.mxu0 %vm2674_vm1, %v2304_v11  ;;  %v2355_v18 = vpack.c.bf16 %v87_v17, %v86_v15  ;;  %v39_v20 = vld [vmem:[%s3605_s0 + $0x18] sm:$0xff]  ;;  %v70_v21 = vld [vmem:[%s3605_s0 + $0x110] sm:$0xff]  ;;  %v57_v24 = vld [vmem:[%s3605_s0 + $0xa8] sm:$0xff] }
   0x7   :  { %2354 = vmatpush3.bf16.xpose.msk.msra.mxu1 %vm2674_vm1, %v2352_v12  ;;  %2309 = vmatprep.subr.msk.bf16.mxu0 %vm2674_vm1, %v2307_v16  ;;  %v71_v22 = vld [vmem:[%s3605_s0 + $0x118] sm:$0xff]  ;;  %v88_v25 = vld [vmem:[%s3605_s0 + $0x1a0] sm:$0xff]  ;;  %v89_v26 = vld [vmem:[%s3605_s0 + $0x1a8] sm:$0xff]  ;;  %v2310_v27 = vpack.c.bf16 %v39_v20, %v38_v19  ;;  %v2313_v29 = vpack.c.bf16 %v57_v24, %v56_v23 }
   0x8   :  { %2357 = vmatprep.subr.msk.bf16.mxu1 %vm2674_vm1, %v2355_v18  ;;  %v2358_v28 = vpack.c.bf16 %v71_v22, %v70_v21  ;;  %v2361_v30 = vpack.c.bf16 %v89_v26, %v88_v25  ;;  %v40_v31 = vld [vmem:[%s3605_s0 + $0x20] sm:$0xff]  ;;  %v41_v32 = vld [vmem:[%s3605_s0 + $0x28] sm:$0xff]  ;;  %v58_v35 = vld [vmem:[%s3605_s0 + $0xb0] sm:$0xff] }
   0x9   :  { %v72_v33 = vld [vmem:[%s3605_s0 + $0x120] sm:$0xff]  ;;  %v73_v34 = vld [vmem:[%s3605_s0 + $0x128] sm:$0xff]  ;;  %v59_v36 = vld [vmem:[%s3605_s0 + $0xb8] sm:$0xff]  ;;  %v2316_v39 = vpack.c.bf16 %v41_v32, %v40_v31 }
   0xa   :  { %v90_v37 = vld [vmem:[%s3605_s0 + $0x1b0] sm:$0xff]  ;;  %v91_v38 = vld [vmem:[%s3605_s0 + $0x1b8] sm:$0xff]  ;;  %v2364_v40 = vpack.c.bf16 %v73_v34, %v72_v33  ;;  %v2319_v41 = vpack.c.bf16 %v59_v36, %v58_v35  ;;  %v2786_v45 = vld [vmem:[%s3606_s1] sm:$0xff] }
   0xb   :  { %v2367_v42 = vpack.c.bf16 %v91_v38, %v90_v37  ;;  %v42_v43 = vld [vmem:[%s3605_s0 + $0x30] sm:$0xff]  ;;  %v43_v44 = vld [vmem:[%s3605_s0 + $0x38] sm:$0xff]  ;;  %v60_v48 = vld [vmem:[%s3605_s0 + $0xc0] sm:$0xff]  ;;  %2141 = vmatprep.mubr.msk.f32.mxu0 %vm212_vm0, %v2786_v45  ;;  %2189 = vmatprep.mubr.msk.f32.mxu1 %vm212_vm0, %v2786_v45 }
   0xc   :  { %v74_v46 = vld [vmem:[%s3605_s0 + $0x130] sm:$0xff]  ;;  %v75_v47 = vld [vmem:[%s3605_s0 + $0x138] sm:$0xff]  ;;  %v61_v49 = vld [vmem:[%s3605_s0 + $0xc8] sm:$0xff]  ;;  %v2322_v53 = vpack.c.bf16 %v43_v44, %v42_v43 }
   0xd   :  { %v92_v50 = vld [vmem:[%s3605_s0 + $0x1c0] sm:$0xff]  ;;  %v93_v51 = vld [vmem:[%s3605_s0 + $0x1c8] sm:$0xff]  ;;  %v2370_v54 = vpack.c.bf16 %v75_v47, %v74_v46  ;;  %v2325_v55 = vpack.c.bf16 %v61_v49, %v60_v48  ;;  %v62_v61 = vld [vmem:[%s3605_s0 + $0xd0] sm:$0xff] }
   0xe   :  { %2312 = vmatpush3.bf16.xpose.msk.msra.mxu0 %vm2674_vm1, %v2310_v27  ;;  %v2373_v56 = vpack.c.bf16 %v93_v51, %v92_v50  ;;  %v44_v57 = vld [vmem:[%s3605_s0 + $0x40] sm:$0xff]  ;;  %v45_v58 = vld [vmem:[%s3605_s0 + $0x48] sm:$0xff]  ;;  %v63_v62 = vld [vmem:[%s3605_s0 + $0xd8] sm:$0xff] }
   0xf   :  { %2360 = vmatpush3.bf16.xpose.msk.msra.mxu1 %vm2674_vm1, %v2358_v28  ;;  %2315 = vmatprep.subr.msk.bf16.mxu0 %vm2674_vm1, %v2313_v29  ;;  %v76_v59 = vld [vmem:[%s3605_s0 + $0x140] sm:$0xff]  ;;  %v77_v60 = vld [vmem:[%s3605_s0 + $0x148] sm:$0xff]  ;;  %v94_v63 = vld [vmem:[%s3605_s0 + $0x1d0] sm:$0xff]  ;;  %v2328_v1 = vpack.c.bf16 %v45_v58, %v44_v57  ;;  %v2331_v3 = vpack.c.bf16 %v63_v62, %v62_v61 }
  0x10   :  { %2363 = vmatprep.subr.msk.bf16.mxu1 %vm2674_vm1, %v2361_v30  ;;  %v95_v0 = vld [vmem:[%s3605_s0 + $0x1d8] sm:$0xff]  ;;  %v2376_v2 = vpack.c.bf16 %v77_v60, %v76_v59  ;;  %v46_v6 = vld [vmem:[%s3605_s0 + $0x50] sm:$0xff]  ;;  %v64_v10 = vld [vmem:[%s3605_s0 + $0xe0] sm:$0xff] }
  0x11   :  { %v2379_v5 = vpack.c.bf16 %v95_v0, %v94_v63  ;;  %v47_v7 = vld [vmem:[%s3605_s0 + $0x58] sm:$0xff]  ;;  %v78_v8 = vld [vmem:[%s3605_s0 + $0x150] sm:$0xff]  ;;  %v65_v11 = vld [vmem:[%s3605_s0 + $0xe8] sm:$0xff] }
  0x12   :  { %v79_v9 = vld [vmem:[%s3605_s0 + $0x158] sm:$0xff]  ;;  %v96_v12 = vld [vmem:[%s3605_s0 + $0x1e0] sm:$0xff]  ;;  %v97_v13 = vld [vmem:[%s3605_s0 + $0x1e8] sm:$0xff]  ;;  %v2334_v14 = vpack.c.bf16 %v47_v7, %v46_v6  ;;  %v2337_v16 = vpack.c.bf16 %v65_v11, %v64_v10 }
  0x13   :  { %v2382_v15 = vpack.c.bf16 %v79_v9, %v78_v8  ;;  %v2385_v17 = vpack.c.bf16 %v97_v13, %v96_v12  ;;  %v48_v18 = vld [vmem:[%s3605_s0 + $0x60] sm:$0xff]  ;;  %v49_v19 = vld [vmem:[%s3605_s0 + $0x68] sm:$0xff]  ;;  %v66_v23 = vld [vmem:[%s3605_s0 + $0xf0] sm:$0xff] }
  0x14   :  { %v80_v20 = vld [vmem:[%s3605_s0 + $0x160] sm:$0xff]  ;;  %v81_v22 = vld [vmem:[%s3605_s0 + $0x168] sm:$0xff]  ;;  %v166_v24 = vld [vmem:[%s3607_s2 + $0x10] sm:$0xff]  ;;  %v2340_v30 = vpack.c.bf16 %v49_v19, %v48_v18 }
  0x15   :  { %v164_v21 = vld [vmem:[%s3607_s2] sm:$0xff]  ;;  %v67_v25 = vld [vmem:[%s3605_s0 + $0xf8] sm:$0xff]  ;;  %v98_v26 = vld [vmem:[%s3605_s0 + $0x1f0] sm:$0xff]  ;;  %184 = vperm.xlu1 %2594, %v166_v24   ;;  %v2388_v31 = vpack.c.bf16 %v81_v22, %v80_v20 }
  0x16   :  { %2318 = vmatpush3.bf16.xpose.msk.msra.mxu0 %vm2674_vm1, %v2316_v39  ;;  %v99_v27 = vld [vmem:[%s3605_s0 + $0x1f8] sm:$0xff]  ;;  %174 = vperm.xlu0 %2593, %v164_v21   ;;  %v165_v28 = vld [vmem:[%s3607_s2 + $0x8] sm:$0xff] }
  0x17   :  { %2366 = vmatpush3.bf16.xpose.msk.msra.mxu1 %vm2674_vm1, %v2364_v40  ;;  %2321 = vmatprep.subr.msk.bf16.mxu0 %vm2674_vm1, %v2319_v41  ;;  %v167_v29 = vld [vmem:[%s3607_s2 + $0x18] sm:$0xff] }
  0x18   :  { %2369 = vmatprep.subr.msk.bf16.mxu1 %vm2674_vm1, %v2367_v42 }
  0x1e   :  { %2324 = vmatpush3.bf16.xpose.msk.msra.mxu0 %vm2674_vm1, %v2322_v53 }
  0x1f   :  { %2372 = vmatpush3.bf16.xpose.msk.msra.mxu1 %vm2674_vm1, %v2370_v54  ;;  %2327 = vmatprep.subr.msk.bf16.mxu0 %vm2674_vm1, %v2325_v55 }
  0x20   :  { %2375 = vmatprep.subr.msk.bf16.mxu1 %vm2674_vm1, %v2373_v56 }
  0x26   :  { %2330 = vmatpush3.bf16.xpose.msk.msra.mxu0 %vm2674_vm1, %v2328_v1 }
  0x27   :  { %2378 = vmatpush3.bf16.xpose.msk.msra.mxu1 %vm2674_vm1, %v2376_v2  ;;  %2333 = vmatprep.subr.msk.bf16.mxu0 %vm2674_vm1, %v2331_v3 }
  0x28   :  { %2381 = vmatprep.subr.msk.bf16.mxu1 %vm2674_vm1, %v2379_v5 }
  0x2e   :  { %2336 = vmatpush3.bf16.xpose.msk.msra.mxu0 %vm2674_vm1, %v2334_v14 }
  0x2f   :  { %2384 = vmatpush3.bf16.xpose.msk.msra.mxu1 %vm2674_vm1, %v2382_v15  ;;  %2339 = vmatprep.subr.msk.bf16.mxu0 %vm2674_vm1, %v2337_v16 }
  0x30   :  { %2387 = vmatprep.subr.msk.bf16.mxu1 %vm2674_vm1, %v2385_v17 }
  0x31   :  { %13 = vsyncpa [#allocation4], 0  ;;  %v2343_v32 = vpack.c.bf16 %v67_v25, %v66_v23  ;;  %v2391_v33 = vpack.c.bf16 %v99_v27, %v98_v26  ;;  %179 = vperm.xlu0 %2593, %v165_v28   ;;  %189 = vperm.xlu1 %2594, %v167_v29   ;;  %v169_v34 = vld [vmem:[%s3607_s2 + $0x28] sm:$0xff]  ;;  %v168_v35 = vld [vmem:[%s3607_s2 + $0x20] sm:$0xff]  ;;  %v2620_v4 = vmov 0.0   ;;  %vm1165_vm2 = vcmask 523264  }
  0x32   :  { %v50_v36 = vld [vmem:[%s3605_s0 + $0x70] sm:$0xff]  ;;  %v51_v37 = vld [vmem:[%s3605_s0 + $0x78] sm:$0xff]  ;;  %v116_v40 = vld [vmem:[%s3605_s0 + $0x280] sm:$0xff] }
  0x33   :  { %v82_v38 = vld [vmem:[%s3605_s0 + $0x170] sm:$0xff]  ;;  %v83_v39 = vld [vmem:[%s3605_s0 + $0x178] sm:$0xff]  ;;  %v117_v41 = vld [vmem:[%s3605_s0 + $0x288] sm:$0xff]  ;;  %v2346_v47 = vpack.c.bf16 %v51_v37, %v50_v36 }
  0x34   :  { %v148_v42 = vld [vmem:[%s3605_s0 + $0x380] sm:$0xff]  ;;  %v149_v43 = vld [vmem:[%s3605_s0 + $0x388] sm:$0xff]  ;;  %v171_v44 = vld [vmem:[%s3607_s2 + $0x38] sm:$0xff]  ;;  %v2394_v48 = vpack.c.bf16 %v83_v39, %v82_v38  ;;  %v2397_v49 = vpack.c.bf16 %v117_v41, %v116_v40 }
  0x35   :  { %199 = vperm.xlu1 %2594, %v169_v34   ;;  %194 = vperm.xlu0 %2593, %v168_v35   ;;  %v170_v46 = vld [vmem:[%s3607_s2 + $0x30] sm:$0xff]  ;;  %v2445_v50 = vpack.c.bf16 %v149_v43, %v148_v42  ;;  %v1141_v51 = vld [vmem:[%s3609_s4] sm:$0xff]  ;;  %v1142_v52 = vld [vmem:[%s3609_s4 + $0x8] sm:$0xff] }
  0x36   :  { %2342 = vmatpush3.bf16.xpose.msk.msra.mxu0 %vm2674_vm1, %v2340_v30  ;;  %v100_v53 = vld [vmem:[%s3605_s0 + $0x200] sm:$0xff]  ;;  %v101_v54 = vld [vmem:[%s3605_s0 + $0x208] sm:$0xff]  ;;  %v118_v57 = vld [vmem:[%s3605_s0 + $0x290] sm:$0xff] }
  0x37   :  { %2390 = vmatpush3.bf16.xpose.msk.msra.mxu1 %vm2674_vm1, %v2388_v31  ;;  %2345 = vmatprep.subr.msk.bf16.mxu0 %vm2674_vm1, %v2343_v32  ;;  %v132_v55 = vld [vmem:[%s3605_s0 + $0x300] sm:$0xff]  ;;  %v133_v56 = vld [vmem:[%s3605_s0 + $0x308] sm:$0xff]  ;;  %v119_v58 = vld [vmem:[%s3605_s0 + $0x298] sm:$0xff]  ;;  %v2400_v63 = vpack.c.bf16 %v101_v54, %v100_v53 }
  0x38   :  { %2393 = vmatprep.subr.msk.bf16.mxu1 %vm2674_vm1, %v2391_v33  ;;  %v150_v59 = vld [vmem:[%s3605_s0 + $0x390] sm:$0xff]  ;;  %v151_v60 = vld [vmem:[%s3605_s0 + $0x398] sm:$0xff]  ;;  %v2448_v0 = vpack.c.bf16 %v133_v56, %v132_v55  ;;  %v3013_v1 = vld [vmem:[%s3606_s1 + $0x8] sm:$0xff]  ;;  %v2403_v2 = vpack.c.bf16 %v119_v58, %v118_v57 }
  0x39   :  { %209 = vperm.xlu1 %2594, %v171_v44   ;;  %204 = vperm.xlu0 %2593, %v170_v46   ;;  %v1143_v61 = vld [vmem:[%s3609_s4 + $0x10] sm:$0xff]  ;;  %v1144_v62 = vld [vmem:[%s3609_s4 + $0x18] sm:$0xff]  ;;  %v2451_v3 = vpack.c.bf16 %v151_v60, %v150_v59  ;;  %v120_v10 = vld [vmem:[%s3605_s0 + $0x2a0] sm:$0xff] }
  0x3a   :  { %v3026_v5 = vld [vmem:[%s3606_s1 + $0x10] sm:$0xff]  ;;  %v103_v7 = vld [vmem:[%s3605_s0 + $0x218] sm:$0xff]  ;;  %v121_v11 = vld [vmem:[%s3605_s0 + $0x2a8] sm:$0xff] }
  0x3b   :  { %v102_v6 = vld [vmem:[%s3605_s0 + $0x210] sm:$0xff]  ;;  %v135_v9 = vld [vmem:[%s3605_s0 + $0x318] sm:$0xff]  ;;  %v152_v12 = vld [vmem:[%s3605_s0 + $0x3a0] sm:$0xff]  ;;  %v2409_v17 = vpack.c.bf16 %v121_v11, %v120_v10 }
  0x3c   :  { %v134_v8 = vld [vmem:[%s3605_s0 + $0x310] sm:$0xff]  ;;  %v153_v13 = vld [vmem:[%s3605_s0 + $0x3a8] sm:$0xff]  ;;  %v2406_v14 = vpack.c.bf16 %v103_v7, %v102_v6  ;;  %v3071_v16 = vld [vmem:[%s3606_s1 + $0x18] sm:$0xff] }
  0x3d   :  { %1147 = vperm.xlu0 %2593, %v1141_v51   ;;  %1152 = vperm.xlu1 %2594, %v1142_v52   ;;  %v2454_v15 = vpack.c.bf16 %v135_v9, %v134_v8  ;;  %v2457_v18 = vpack.c.bf16 %v153_v13, %v152_v12  ;;  %v3084_v19 = vld [vmem:[%s3606_s1 + $0x20] sm:$0xff]  ;;  %v105_v21 = vld [vmem:[%s3605_s0 + $0x228] sm:$0xff]  ;;  %v122_v24 = vld [vmem:[%s3605_s0 + $0x2b0] sm:$0xff] }
  0x3e   :  { %2348 = vmatpush3.bf16.xpose.msk.msra.mxu0 %vm2674_vm1, %v2346_v47  ;;  %v104_v20 = vld [vmem:[%s3605_s0 + $0x220] sm:$0xff]  ;;  %v137_v23 = vld [vmem:[%s3605_s0 + $0x328] sm:$0xff]  ;;  %v123_v25 = vld [vmem:[%s3605_s0 + $0x2b8] sm:$0xff] }
  0x3f   :  { %2396 = vmatpush3.bf16.xpose.msk.msra.mxu1 %vm2674_vm1, %v2394_v48  ;;  %2399 = vmatprep.subr.msk.bf16.mxu0 %vm2674_vm1, %v2397_v49  ;;  %v136_v22 = vld [vmem:[%s3605_s0 + $0x320] sm:$0xff]  ;;  %v154_v26 = vld [vmem:[%s3605_s0 + $0x3b0] sm:$0xff]  ;;  %v155_v27 = vld [vmem:[%s3605_s0 + $0x3b8] sm:$0xff]  ;;  %v2412_v28 = vpack.c.bf16 %v105_v21, %v104_v20  ;;  %v2415_v31 = vpack.c.bf16 %v123_v25, %v122_v24 }
  0x40   :  { %2447 = vmatprep.subr.msk.bf16.mxu1 %vm2674_vm1, %v2445_v50  ;;  %v2460_v29 = vpack.c.bf16 %v137_v23, %v136_v22  ;;  %v3129_v30 = vld [vmem:[%s3606_s1 + $0x28] sm:$0xff]  ;;  %v2463_v32 = vpack.c.bf16 %v155_v27, %v154_v26  ;;  %v3142_v33 = vld [vmem:[%s3606_s1 + $0x30] sm:$0xff]  ;;  %v107_v35 = vld [vmem:[%s3605_s0 + $0x238] sm:$0xff] }
  0x41   :  { %1157 = vperm.xlu0 %2593, %v1143_v61   ;;  %1162 = vperm.xlu1 %2594, %v1144_v62   ;;  %v106_v34 = vld [vmem:[%s3605_s0 + $0x230] sm:$0xff]  ;;  %v139_v37 = vld [vmem:[%s3605_s0 + $0x338] sm:$0xff]  ;;  %v124_v38 = vld [vmem:[%s3605_s0 + $0x2c0] sm:$0xff] }
  0x42   :  { %v138_v36 = vld [vmem:[%s3605_s0 + $0x330] sm:$0xff]  ;;  %v125_v39 = vld [vmem:[%s3605_s0 + $0x2c8] sm:$0xff]  ;;  %v156_v40 = vld [vmem:[%s3605_s0 + $0x3c0] sm:$0xff]  ;;  %v2418_v42 = vpack.c.bf16 %v107_v35, %v106_v34 }
  0x43   :  { %v157_v41 = vld [vmem:[%s3605_s0 + $0x3c8] sm:$0xff]  ;;  %v2466_v43 = vpack.c.bf16 %v139_v37, %v138_v36  ;;  %v3187_v44 = vld [vmem:[%s3606_s1 + $0x38] sm:$0xff]  ;;  %v2421_v46 = vpack.c.bf16 %v125_v39, %v124_v38  ;;  %v108_v48 = vld [vmem:[%s3605_s0 + $0x240] sm:$0xff] }
  0x44   :  { %v2469_v47 = vpack.c.bf16 %v157_v41, %v156_v40  ;;  %v109_v49 = vld [vmem:[%s3605_s0 + $0x248] sm:$0xff]  ;;  %v140_v50 = vld [vmem:[%s3605_s0 + $0x340] sm:$0xff]  ;;  %v126_v52 = vld [vmem:[%s3605_s0 + $0x2d0] sm:$0xff] }
  0x45   :  { %2142 = vmatmul.mubr.msk.f32.vlgmr.msra.gmra.mrb[0].mxu0 %vm212_vm0, %v2786_v45  ;;  %v141_v51 = vld [vmem:[%s3605_s0 + $0x348] sm:$0xff]  ;;  %v127_v53 = vld [vmem:[%s3605_s0 + $0x2d8] sm:$0xff]  ;;  %v158_v54 = vld [vmem:[%s3605_s0 + $0x3d0] sm:$0xff]  ;;  %v2424_v56 = vpack.c.bf16 %v109_v49, %v108_v48 }
  0x46   :  { %2190 = vmatmul.mubr.msk.f32.vlgmr.msra.gmra.mrb[0].mxu1 %vm212_vm0, %v2786_v45  ;;  %2402 = vmatpush3.bf16.xpose.msk.msra.mxu0 %vm2674_vm1, %v2400_v63  ;;  %v159_v55 = vld [vmem:[%s3605_s0 + $0x3d8] sm:$0xff]  ;;  %v2472_v57 = vpack.c.bf16 %v141_v51, %v140_v50  ;;  %v2427_v58 = vpack.c.bf16 %v127_v53, %v126_v52  ;;  %v110_v60 = vld [vmem:[%s3605_s0 + $0x250] sm:$0xff]  ;;  %v161_v6 = vld [vmem:[%s3605_s0 + $0x3e8] sm:$0xff] }
  0x47   :  { %2450 = vmatpush3.bf16.xpose.msk.msra.mxu1 %vm2674_vm1, %v2448_v0  ;;  %2143 = vmatprep.mubr.msk.f32.mxu0 %vm212_vm0, %v3013_v1  ;;  %v2475_v59 = vpack.c.bf16 %v159_v55, %v158_v54  ;;  %v111_v61 = vld [vmem:[%s3605_s0 + $0x258] sm:$0xff]  ;;  %v142_v62 = vld [vmem:[%s3605_s0 + $0x350] sm:$0xff]  ;;  %v128_v0 = vld [vmem:[%s3605_s0 + $0x2e0] sm:$0xff] }
  0x48   :  { %2191 = vmatprep.mubr.msk.f32.mxu1 %vm212_vm0, %v3013_v1  ;;  %2405 = vmatprep.subr.msk.bf16.mxu0 %vm2674_vm1, %v2403_v2  ;;  %v143_v63 = vld [vmem:[%s3605_s0 + $0x358] sm:$0xff]  ;;  %v129_v2 = vld [vmem:[%s3605_s0 + $0x2e8] sm:$0xff]  ;;  %v2430_v7 = vpack.c.bf16 %v111_v61, %v110_v60  ;;  %v112_v11 = vld [vmem:[%s3605_s0 + $0x260] sm:$0xff] }
  0x49   :  { %2453 = vmatprep.subr.msk.bf16.mxu1 %vm2674_vm1, %v2451_v3  ;;  %2144 = vmatmul.mubr.msk.f32.gmra.mrb[2].mxu0 %vm212_vm0, %v3013_v1  ;;  %v160_v3 = vld [vmem:[%s3605_s0 + $0x3e0] sm:$0xff]  ;;  %v2478_v8 = vpack.c.bf16 %v143_v63, %v142_v62  ;;  %v2433_v9 = vpack.c.bf16 %v129_v2, %v128_v0  ;;  %v113_v12 = vld [vmem:[%s3605_s0 + $0x268] sm:$0xff]  ;;  %v163_v20 = vld [vmem:[%s3605_s0 + $0x3f8] sm:$0xff] }
  0x4a   :  { %2192 = vmatmul.mubr.msk.f32.gmra.mrb[2].mxu1 %vm212_vm0, %v3013_v1  ;;  %2145 = vmatprep.mubr.msk.f32.mxu0 %vm212_vm0, %v3026_v5  ;;  %v2481_v10 = vpack.c.bf16 %v161_v6, %v160_v3  ;;  %v144_v13 = vld [vmem:[%s3605_s0 + $0x360] sm:$0xff]  ;;  %v2436_v21 = vpack.c.bf16 %v113_v12, %v112_v11  ;;  %v114_v25 = vld [vmem:[%s3605_s0 + $0x270] sm:$0xff]  ;;  %v115_v26 = vld [vmem:[%s3605_s0 + $0x278] sm:$0xff] }
  0x4b   :  { %2193 = vmatprep.mubr.msk.f32.mxu1 %vm212_vm0, %v3026_v5  ;;  %v146_v27 = vld [vmem:[%s3605_s0 + $0x370] sm:$0xff] }
  0x4d   :  { %2146 = vmatmul.mubr.msk.f32.gmra.mrb[4].mxu0 %vm212_vm0, %v3026_v5 }
  0x4e   :  { %2194 = vmatmul.mubr.msk.f32.gmra.mrb[4].mxu1 %vm212_vm0, %v3026_v5  ;;  %2408 = vmatpush3.bf16.xpose.msk.msra.mxu0 %vm2674_vm1, %v2406_v14  ;;  %v145_v14 = vld [vmem:[%s3605_s0 + $0x368] sm:$0xff] }
  0x4f   :  { %2456 = vmatpush3.bf16.xpose.msk.msra.mxu1 %vm2674_vm1, %v2454_v15  ;;  %2147 = vmatprep.mubr.msk.f32.mxu0 %vm212_vm0, %v3071_v16  ;;  %v130_v15 = vld [vmem:[%s3605_s0 + $0x2f0] sm:$0xff]  ;;  %v2484_v22 = vpack.c.bf16 %v145_v14, %v144_v13 }
  0x50   :  { %2195 = vmatprep.mubr.msk.f32.mxu1 %vm212_vm0, %v3071_v16  ;;  %2411 = vmatprep.subr.msk.bf16.mxu0 %vm2674_vm1, %v2409_v17  ;;  %v131_v17 = vld [vmem:[%s3605_s0 + $0x2f8] sm:$0xff] }
  0x51   :  { %2459 = vmatprep.subr.msk.bf16.mxu1 %vm2674_vm1, %v2457_v18  ;;  %2148 = vmatmul.mubr.msk.f32.gmra.mrb[6].mxu0 %vm212_vm0, %v3071_v16  ;;  %v162_v18 = vld [vmem:[%s3605_s0 + $0x3f0] sm:$0xff]  ;;  %v2439_v23 = vpack.c.bf16 %v131_v17, %v130_v15 }
  0x52   :  { %2196 = vmatmul.mubr.msk.f32.gmra.mrb[6].mxu1 %vm212_vm0, %v3071_v16  ;;  %2149 = vmatprep.mubr.msk.f32.mxu0 %vm212_vm0, %v3084_v19  ;;  %v2487_v24 = vpack.c.bf16 %v163_v20, %v162_v18 }
  0x53   :  { %2197 = vmatprep.mubr.msk.f32.mxu1 %vm212_vm0, %v3084_v19 }
  0x55   :  { %2150 = vmatmul.mubr.msk.f32.gmra.mrb[8].mxu0 %vm212_vm0, %v3084_v19 }
  0x56   :  { %2198 = vmatmul.mubr.msk.f32.gmra.mrb[8].mxu1 %vm212_vm0, %v3084_v19  ;;  %2414 = vmatpush3.bf16.xpose.msk.msra.mxu0 %vm2674_vm1, %v2412_v28  ;;  %v147_v28 = vld [vmem:[%s3605_s0 + $0x378] sm:$0xff] }
  0x57   :  { %2462 = vmatpush3.bf16.xpose.msk.msra.mxu1 %vm2674_vm1, %v2460_v29  ;;  %2151 = vmatprep.mubr.msk.f32.mxu0 %vm212_vm0, %v3129_v30  ;;  %v2442_v29 = vpack.c.bf16 %v115_v26, %v114_v25 }
  0x58   :  { %2199 = vmatprep.mubr.msk.f32.mxu1 %vm212_vm0, %v3129_v30  ;;  %2417 = vmatprep.subr.msk.bf16.mxu0 %vm2674_vm1, %v2415_v31  ;;  %v2490_v31 = vpack.c.bf16 %v147_v28, %v146_v27 }
  0x59   :  { %2465 = vmatprep.subr.msk.bf16.mxu1 %vm2674_vm1, %v2463_v32  ;;  %2152 = vmatmul.mubr.msk.f32.gmra.mrb[10].mxu0 %vm212_vm0, %v3129_v30 }
  0x5a   :  { %2200 = vmatmul.mubr.msk.f32.gmra.mrb[10].mxu1 %vm212_vm0, %v3129_v30  ;;  %2153 = vmatprep.mubr.msk.f32.mxu0 %vm212_vm0, %v3142_v33 }
  0x5b   :  { %2201 = vmatprep.mubr.msk.f32.mxu1 %vm212_vm0, %v3142_v33 }
  0x5d   :  { %2154 = vmatmul.mubr.msk.f32.gmra.mrb[12].mxu0 %vm212_vm0, %v3142_v33 }
  0x5e   :  { %2202 = vmatmul.mubr.msk.f32.gmra.mrb[12].mxu1 %vm212_vm0, %v3142_v33  ;;  %2420 = vmatpush3.bf16.xpose.msk.msra.mxu0 %vm2674_vm1, %v2418_v42 }
  0x5f   :  { %2468 = vmatpush3.bf16.xpose.msk.msra.mxu1 %vm2674_vm1, %v2466_v43  ;;  %2155 = vmatprep.mubr.msk.f32.mxu0 %vm212_vm0, %v3187_v44 }
  0x60   :  { %2203 = vmatprep.mubr.msk.f32.mxu1 %vm212_vm0, %v3187_v44  ;;  %2423 = vmatprep.subr.msk.bf16.mxu0 %vm2674_vm1, %v2421_v46 }
  0x61   :  { %2471 = vmatprep.subr.msk.bf16.mxu1 %vm2674_vm1, %v2469_v47  ;;  %2156 = vmatmul.mubr.msk.f32.gmra.mrb[14].mxu0 %vm212_vm0, %v3187_v44 }
  0x62   :  { %2204 = vmatmul.mubr.msk.f32.gmra.mrb[14].mxu1 %vm212_vm0, %v3187_v44  ;;  %2237 = vmatprep.mubr.msk.f32.mxu0 %vm212_vm0, %v2786_v45 }
  0x63   :  { %2285 = vmatprep.mubr.msk.f32.mxu1 %vm212_vm0, %v2786_v45 }
  0x66   :  { %2426 = vmatpush3.bf16.xpose.msk.msra.mxu0 %vm2674_vm1, %v2424_v56 }
  0x67   :  { %2474 = vmatpush3.bf16.xpose.msk.msra.mxu1 %vm2674_vm1, %v2472_v57  ;;  %2429 = vmatprep.subr.msk.bf16.mxu0 %vm2674_vm1, %v2427_v58 }
  0x68   :  { %2477 = vmatprep.subr.msk.bf16.mxu1 %vm2674_vm1, %v2475_v59 }
  0x6e   :  { %2432 = vmatpush3.bf16.xpose.msk.msra.mxu0 %vm2674_vm1, %v2430_v7 }
  0x6f   :  { %2480 = vmatpush3.bf16.xpose.msk.msra.mxu1 %vm2674_vm1, %v2478_v8  ;;  %2435 = vmatprep.subr.msk.bf16.mxu0 %vm2674_vm1, %v2433_v9 }
  0x70   :  { %2483 = vmatprep.subr.msk.bf16.mxu1 %vm2674_vm1, %v2481_v10 }
  0x76   :  { %2438 = vmatpush3.bf16.xpose.msk.msra.mxu0 %vm2674_vm1, %v2436_v21 }
  0x77   :  { %2486 = vmatpush3.bf16.xpose.msk.msra.mxu1 %vm2674_vm1, %v2484_v22  ;;  %2441 = vmatprep.subr.msk.bf16.mxu0 %vm2674_vm1, %v2439_v23 }
  0x78   :  { %2489 = vmatprep.subr.msk.bf16.mxu1 %vm2674_vm1, %v2487_v24 }
  0x7e   :  { %2444 = vmatpush3.bf16.xpose.msk.msra.mxu0 %vm2674_vm1, %v2442_v29 }
  0x7f   :  { %2492 = vmatpush3.bf16.xpose.msk.msra.mxu1 %vm2674_vm1, %v2490_v31 }
  0x85   :  { %2238 = vmatmul.mubr.msk.f32.vlgmr.msra.gmra.mrb[16].mxu0 %vm212_vm0, %v2786_v45 }
  0x86   :  { %2286 = vmatmul.mubr.msk.f32.vlgmr.msra.gmra.mrb[16].mxu1 %vm212_vm0, %v2786_v45  ;;  %2239 = vmatprep.mubr.msk.f32.mxu0 %vm212_vm0, %v3013_v1 }
  0x87   :  { %2287 = vmatprep.mubr.msk.f32.mxu1 %vm212_vm0, %v3013_v1 }
  0x89   :  { %2240 = vmatmul.mubr.msk.f32.gmra.mrb[18].mxu0 %vm212_vm0, %v3013_v1 }
  0x8a   :  { %2288 = vmatmul.mubr.msk.f32.gmra.mrb[18].mxu1 %vm212_vm0, %v3013_v1  ;;  %2241 = vmatprep.mubr.msk.f32.mxu0 %vm212_vm0, %v3026_v5 }
  0x8b   :  { %2289 = vmatprep.mubr.msk.f32.mxu1 %vm212_vm0, %v3026_v5 }
  0x8d   :  { %2242 = vmatmul.mubr.msk.f32.gmra.mrb[20].mxu0 %vm212_vm0, %v3026_v5 }
  0x8e   :  { %2290 = vmatmul.mubr.msk.f32.gmra.mrb[20].mxu1 %vm212_vm0, %v3026_v5  ;;  %2243 = vmatprep.mubr.msk.f32.mxu0 %vm212_vm0, %v3071_v16 }
  0x8f   :  { %2291 = vmatprep.mubr.msk.f32.mxu1 %vm212_vm0, %v3071_v16 }
  0x91   :  { %2244 = vmatmul.mubr.msk.f32.gmra.mrb[22].mxu0 %vm212_vm0, %v3071_v16 }
  0x92   :  { %2292 = vmatmul.mubr.msk.f32.gmra.mrb[22].mxu1 %vm212_vm0, %v3071_v16  ;;  %2245 = vmatprep.mubr.msk.f32.mxu0 %vm212_vm0, %v3084_v19 }
  0x93   :  { %2293 = vmatprep.mubr.msk.f32.mxu1 %vm212_vm0, %v3084_v19 }
  0x94   :  { %v3393_v34 = vpop.permute.xlu1 %184 }
  0x95   :  { %2246 = vmatmul.mubr.msk.f32.gmra.mrb[24].mxu0 %vm212_vm0, %v3084_v19  ;;  %v3387_v45 = vpop.permute.xlu0 %174 }
  0x96   :  { %2294 = vmatmul.mubr.msk.f32.gmra.mrb[24].mxu1 %vm212_vm0, %v3084_v19  ;;  %2247 = vmatprep.mubr.msk.f32.mxu0 %vm212_vm0, %v3129_v30 }
  0x97   :  { %2295 = vmatprep.mubr.msk.f32.mxu1 %vm212_vm0, %v3129_v30 }
  0x99   :  { %2248 = vmatmul.mubr.msk.f32.gmra.mrb[26].mxu0 %vm212_vm0, %v3129_v30 }
  0x9a   :  { %2296 = vmatmul.mubr.msk.f32.gmra.mrb[26].mxu1 %vm212_vm0, %v3129_v30  ;;  %2249 = vmatprep.mubr.msk.f32.mxu0 %vm212_vm0, %v3142_v33 }
  0x9b   :  { %2297 = vmatprep.mubr.msk.f32.mxu1 %vm212_vm0, %v3142_v33 }
  0x9d   :  { %2250 = vmatmul.mubr.msk.f32.gmra.mrb[28].mxu0 %vm212_vm0, %v3142_v33 }
  0x9e   :  { %2298 = vmatmul.mubr.msk.f32.gmra.mrb[28].mxu1 %vm212_vm0, %v3142_v33  ;;  %2251 = vmatprep.mubr.msk.f32.mxu0 %vm212_vm0, %v3187_v44 }
  0x9f   :  { %2299 = vmatprep.mubr.msk.f32.mxu1 %vm212_vm0, %v3187_v44 }
  0xa1   :  { %2252 = vmatmul.mubr.msk.f32.gmra.mrb[30].mxu0 %vm212_vm0, %v3187_v44 }
  0xa2   :  { %2300 = vmatmul.mubr.msk.f32.gmra.mrb[30].mxu1 %vm212_vm0, %v3187_v44  ;;  %1242 = vmatprep.mubr.f32.mxu0 %v2620_v4 }
  0xa3   :  { %1331 = vmatprep.mubr.f32.mxu1 %v2620_v4 }
  0xb0   :  { %v3389_v30 = vpop.permute.xlu0 %179  ;;  %v3405_v3 = vpop.permute.xlu1 %189 }
  0xb4   :  { %v3411_v20 = vpop.permute.xlu0 %194 }
 0x118   :  { %v687_v1 = vpop.f32.mrb[0].mxu0 }
 0x119   :  { %v800_v5 = vpop.f32.mrb[0].mxu1  ;;  %v689_v16 = vpop.f32.mrb[1].mxu0  ;;  %v688_v32 = vadd.f32 %v687_v1, %v3387_v45 }
 0x11a   :  { %v802_v19 = vpop.f32.mrb[1].mxu1  ;;  %v801_v33 = vadd.f32 %v800_v5, %v3387_v45  ;;  %v690_v35 = vadd.f32 %v689_v16, %v3387_v45 }
 0x11b   :  { %v803_v36 = vadd.f32 %v802_v19, %v3387_v45  ;;  %v1073_v46 = vmax.f32 %v688_v32, 0.0  ;;  %v3415_v32 = vpop.permute.xlu1 %199 }
 0x11c   :  { %v693_v37 = vpop.f32.mrb[2].mxu0  ;;  %v1075_v47 = vmax.f32 %v801_v33, 0.0  ;;  %v1074_v50 = vmax.f32 %v690_v35, 0.0 }
 0x11d   :  { %v806_v38 = vpop.f32.mrb[2].mxu1  ;;  %v694_v39 = vadd.f32 %v693_v37, %v3389_v30  ;;  %v695_v41 = vpop.f32.mrb[3].mxu0  ;;  %v1076_v51 = vmax.f32 %v803_v36, 0.0 }
 0x11e   :  { %v807_v40 = vadd.f32 %v806_v38, %v3389_v30  ;;  %v808_v42 = vpop.f32.mrb[3].mxu1  ;;  %v696_v43 = vadd.f32 %v695_v41, %v3389_v30 }
 0x11f   :  { %v809_v44 = vadd.f32 %v808_v42, %v3389_v30  ;;  %v1081_v48 = vmax.f32 %v694_v39, 0.0 }
 0x120   :  { %v1083_v49 = vmax.f32 %v807_v40, 0.0  ;;  %v1082_v52 = vmax.f32 %v696_v43, 0.0  ;;  %v699_v54 = vpop.f32.mrb[4].mxu0 }
 0x121   :  { %v1084_v53 = vmax.f32 %v809_v44, 0.0  ;;  %v812_v55 = vpop.f32.mrb[4].mxu1  ;;  %v2495_v56 = vpack.c.bf16 %v1081_v48, %v1073_v46  ;;  %v700_v58 = vadd.f32 %v699_v54, %v3393_v34  ;;  %v701_v60 = vpop.f32.mrb[5].mxu0 }
 0x122   :  { %v2511_v57 = vpack.c.bf16 %v1083_v49, %v1075_v47  ;;  %v813_v59 = vadd.f32 %v812_v55, %v3393_v34  ;;  %v814_v61 = vpop.f32.mrb[5].mxu1  ;;  %v2493_v62 = vpack.c.bf16 %v1082_v52, %v1074_v50  ;;  %v702_v0 = vadd.f32 %v701_v60, %v3393_v34  ;;  %v3423_v49 = vpop.permute.xlu0 %204 }
 0x123   :  { %v2509_v63 = vpack.c.bf16 %v1084_v53, %v1076_v51  ;;  %v815_v2 = vadd.f32 %v814_v61, %v3393_v34  ;;  %v1089_v8 = vmax.f32 %v700_v58, 0.0 }
 0x124   :  { %2494 = vmatprep.subr.bf16.mxu0 %v2493_v62  ;;  %v705_v6 = vpop.f32.mrb[6].mxu0  ;;  %v1091_v9 = vmax.f32 %v813_v59, 0.0  ;;  %v1090_v14 = vmax.f32 %v702_v0, 0.0  ;;  %v3427_v0 = vpop.permute.xlu1 %209 }
 0x125   :  { %2510 = vmatprep.subr.bf16.mxu1 %v2509_v63  ;;  %v818_v7 = vpop.f32.mrb[6].mxu1  ;;  %2496 = vmatpush1.bf16.msra.mxu0 %v2495_v56  ;;  %v707_v10 = vpop.f32.mrb[7].mxu0  ;;  %v706_v12 = vadd.f32 %v705_v6, %v3405_v3  ;;  %v1092_v15 = vmax.f32 %v815_v2, 0.0 }
 0x126   :  { %2512 = vmatpush1.bf16.msra.mxu1 %v2511_v57  ;;  %v820_v11 = vpop.f32.mrb[7].mxu1  ;;  %v819_v13 = vadd.f32 %v818_v7, %v3405_v3  ;;  %v708_v17 = vadd.f32 %v707_v10, %v3405_v3 }
 0x127   :  { %v821_v18 = vadd.f32 %v820_v11, %v3405_v3  ;;  %v1097_v21 = vmax.f32 %v706_v12, 0.0 }
 0x128   :  { %v1099_v22 = vmax.f32 %v819_v13, 0.0  ;;  %v1098_v23 = vmax.f32 %v708_v17, 0.0  ;;  %v711_v25 = vpop.f32.mrb[8].mxu0 }
 0x129   :  { %v1100_v24 = vmax.f32 %v821_v18, 0.0  ;;  %v824_v26 = vpop.f32.mrb[8].mxu1  ;;  %v713_v27 = vpop.f32.mrb[9].mxu0  ;;  %v2499_v29 = vpack.c.bf16 %v1097_v21, %v1089_v8  ;;  %v712_v1 = vadd.f32 %v711_v25, %v3411_v20 }
 0x12a   :  { %v826_v28 = vpop.f32.mrb[9].mxu1  ;;  %v2515_v31 = vpack.c.bf16 %v1099_v22, %v1091_v9  ;;  %v825_v5 = vadd.f32 %v824_v26, %v3411_v20  ;;  %v2497_v16 = vpack.c.bf16 %v1098_v23, %v1090_v14  ;;  %v714_v33 = vadd.f32 %v713_v27, %v3411_v20 }
 0x12b   :  { %v2513_v19 = vpack.c.bf16 %v1100_v24, %v1092_v15  ;;  %v827_v35 = vadd.f32 %v826_v28, %v3411_v20  ;;  %v1105_v41 = vmax.f32 %v712_v1, 0.0  ;;  %v3449_v1 = vld [vmem:[%s3608_s3 + $0x8] sm:$0xff] }
 0x12c   :  { %v717_v36 = vpop.f32.mrb[10].mxu0  ;;  %2498 = vmatprep.subr.bf16.mxu0 %v2497_v16  ;;  %v1107_v43 = vmax.f32 %v825_v5, 0.0  ;;  %v1106_v46 = vmax.f32 %v714_v33, 0.0  ;;  %v3460_v5 = vld [vmem:[%s3608_s3 + $0x10] sm:$0xff]  ;;  %v3471_v16 = vld [vmem:[%s3608_s3 + $0x18] sm:$0xff] }
 0x12d   :  { %v830_v37 = vpop.f32.mrb[10].mxu1  ;;  %2514 = vmatprep.subr.bf16.mxu1 %v2513_v19  ;;  %v719_v38 = vpop.f32.mrb[11].mxu0  ;;  %2500 = vmatpush1.bf16.msra.mxu0 %v2499_v29  ;;  %v718_v40 = vadd.f32 %v717_v36, %v3415_v32  ;;  %v1108_v48 = vmax.f32 %v827_v35, 0.0 }
 0x12e   :  { %v832_v39 = vpop.f32.mrb[11].mxu1  ;;  %2516 = vmatpush1.bf16.msra.mxu1 %v2515_v31  ;;  %v831_v42 = vadd.f32 %v830_v37, %v3415_v32  ;;  %v720_v44 = vadd.f32 %v719_v38, %v3415_v32  ;;  %v3438_v31 = vld [vmem:[%s3608_s3] sm:$0xff] }
 0x12f   :  { %v833_v47 = vadd.f32 %v832_v39, %v3415_v32  ;;  %v1113_v50 = vmax.f32 %v718_v40, 0.0 }
 0x130   :  { %v1115_v51 = vmax.f32 %v831_v42, 0.0  ;;  %v1114_v52 = vmax.f32 %v720_v44, 0.0  ;;  %v723_v54 = vpop.f32.mrb[12].mxu0 }
 0x131   :  { %v1116_v53 = vmax.f32 %v833_v47, 0.0  ;;  %v836_v55 = vpop.f32.mrb[12].mxu1  ;;  %v725_v56 = vpop.f32.mrb[13].mxu0  ;;  %v2503_v58 = vpack.c.bf16 %v1113_v50, %v1105_v41  ;;  %v724_v60 = vadd.f32 %v723_v54, %v3423_v49 }
 0x132   :  { %v838_v57 = vpop.f32.mrb[13].mxu1  ;;  %v2519_v59 = vpack.c.bf16 %v1115_v51, %v1107_v43  ;;  %v837_v61 = vadd.f32 %v836_v55, %v3423_v49  ;;  %v2501_v62 = vpack.c.bf16 %v1114_v52, %v1106_v46  ;;  %v726_v2 = vadd.f32 %v725_v56, %v3423_v49 }
 0x133   :  { %v2517_v63 = vpack.c.bf16 %v1116_v53, %v1108_v48  ;;  %v839_v6 = vadd.f32 %v838_v57, %v3423_v49  ;;  %v1121_v12 = vmax.f32 %v724_v60, 0.0 }
 0x134   :  { %v729_v7 = vpop.f32.mrb[14].mxu0  ;;  %2502 = vmatprep.subr.bf16.mxu0 %v2501_v62  ;;  %v1123_v14 = vmax.f32 %v837_v61, 0.0  ;;  %v1122_v17 = vmax.f32 %v726_v2, 0.0 }
 0x135   :  { %v842_v8 = vpop.f32.mrb[14].mxu1  ;;  %2518 = vmatprep.subr.bf16.mxu1 %v2517_v63  ;;  %v731_v9 = vpop.f32.mrb[15].mxu0  ;;  %2504 = vmatpush1.bf16.msra.mxu0 %v2503_v58  ;;  %v730_v11 = vadd.f32 %v729_v7, %v3427_v0  ;;  %v1124_v21 = vmax.f32 %v839_v6, 0.0 }
 0x136   :  { %v844_v10 = vpop.f32.mrb[15].mxu1  ;;  %2520 = vmatpush1.bf16.msra.mxu1 %v2519_v59  ;;  %v843_v13 = vadd.f32 %v842_v8, %v3427_v0  ;;  %v732_v15 = vadd.f32 %v731_v9, %v3427_v0 }
 0x137   :  { %v845_v18 = vadd.f32 %v844_v10, %v3427_v0  ;;  %v1129_v22 = vmax.f32 %v730_v11, 0.0 }
 0x138   :  { %v1131_v23 = vmax.f32 %v843_v13, 0.0  ;;  %v1130_v24 = vmax.f32 %v732_v15, 0.0 }
 0x139   :  { %v1132_v25 = vmax.f32 %v845_v18, 0.0  ;;  %v2507_v26 = vpack.c.bf16 %v1129_v22, %v1121_v12 }
 0x13a   :  { %v2523_v27 = vpack.c.bf16 %v1131_v23, %v1123_v14  ;;  %v2505_v28 = vpack.c.bf16 %v1130_v24, %v1122_v17 }
 0x13b   :  { %v2521_v29 = vpack.c.bf16 %v1132_v25, %v1124_v21 }
 0x13c   :  { %2506 = vmatprep.subr.bf16.mxu0 %v2505_v28 }
 0x13d   :  { %2522 = vmatprep.subr.bf16.mxu1 %v2521_v29  ;;  %2508 = vmatpush1.bf16.msra.mxu0 %v2507_v26 }
 0x13e   :  { %2524 = vmatpush1.bf16.msra.mxu1 %v2523_v27 }
 0x140   :  { %2089 = vmatmul.mubr.msk.f32.vlgmr.msra.gmra.mrb[32].mxu0 %vm1165_vm2, %v3438_v31 }
 0x141   :  { %2093 = vmatmul.mubr.msk.f32.vlgmr.msra.gmra.mrb[32].mxu1 %vm1165_vm2, %v3438_v31  ;;  %1248 = vmatprep.mubr.f32.mxu0 %v2620_v4 }
 0x142   :  { %1337 = vmatprep.mubr.f32.mxu1 %v2620_v4 }
 0x144   :  { %2090 = vmatmul.mubr.msk.f32.gmra.mrb[34].mxu0 %vm1165_vm2, %v3449_v1 }
 0x145   :  { %2094 = vmatmul.mubr.msk.f32.gmra.mrb[34].mxu1 %vm1165_vm2, %v3449_v1  ;;  %1254 = vmatprep.mubr.f32.mxu0 %v2620_v4 }
 0x146   :  { %1343 = vmatprep.mubr.f32.mxu1 %v2620_v4 }
 0x148   :  { %2091 = vmatmul.mubr.msk.f32.gmra.mrb[36].mxu0 %vm1165_vm2, %v3460_v5 }
 0x149   :  { %2095 = vmatmul.mubr.msk.f32.gmra.mrb[36].mxu1 %vm1165_vm2, %v3460_v5  ;;  %1260 = vmatprep.mubr.f32.mxu0 %v2620_v4 }
 0x14a   :  { %1349 = vmatprep.mubr.f32.mxu1 %v2620_v4 }
 0x14c   :  { %2092 = vmatmul.mubr.msk.f32.gmra.mrb[38].mxu0 %vm1165_vm2, %v3471_v16 }
 0x14d   :  { %2096 = vmatmul.mubr.msk.f32.gmra.mrb[38].mxu1 %vm1165_vm2, %v3471_v16  ;;  %1420 = vmatprep.mubr.f32.mxu0 %v2620_v4 }
 0x14e   :  { %1509 = vmatprep.mubr.f32.mxu1 %v2620_v4 }
 0x158   :  { %v913_v19 = vpop.f32.mrb[16].mxu0 }
 0x159   :  { %v1026_v33 = vpop.f32.mrb[16].mxu1  ;;  %v915_v35 = vpop.f32.mrb[17].mxu0  ;;  %v914_v37 = vadd.f32 %v913_v19, %v3387_v45 }
 0x15a   :  { %v1028_v36 = vpop.f32.mrb[17].mxu1  ;;  %v1027_v38 = vadd.f32 %v1026_v33, %v3387_v45  ;;  %v916_v39 = vadd.f32 %v915_v35, %v3387_v45 }
 0x15b   :  { %v1029_v40 = vadd.f32 %v1028_v36, %v3387_v45  ;;  %v1077_v51 = vmax.f32 %v914_v37, 0.0 }
 0x15c   :  { %v919_v41 = vpop.f32.mrb[18].mxu0  ;;  %v1079_v52 = vmax.f32 %v1027_v38, 0.0  ;;  %v1078_v55 = vmax.f32 %v916_v39, 0.0 }
 0x15d   :  { %v1032_v42 = vpop.f32.mrb[18].mxu1  ;;  %v920_v43 = vadd.f32 %v919_v41, %v3389_v30  ;;  %v921_v46 = vpop.f32.mrb[19].mxu0  ;;  %v1080_v56 = vmax.f32 %v1029_v40, 0.0 }
 0x15e   :  { %v1033_v44 = vadd.f32 %v1032_v42, %v3389_v30  ;;  %v1034_v47 = vpop.f32.mrb[19].mxu1  ;;  %v922_v48 = vadd.f32 %v921_v46, %v3389_v30 }
 0x15f   :  { %v1035_v50 = vadd.f32 %v1034_v47, %v3389_v30  ;;  %v1085_v53 = vmax.f32 %v920_v43, 0.0 }
 0x160   :  { %v1087_v54 = vmax.f32 %v1033_v44, 0.0  ;;  %v1086_v57 = vmax.f32 %v922_v48, 0.0  ;;  %v925_v58 = vpop.f32.mrb[20].mxu0 }
 0x161   :  { %v1088_v45 = vmax.f32 %v1035_v50, 0.0  ;;  %v1038_v59 = vpop.f32.mrb[20].mxu1  ;;  %v2527_v60 = vpack.c.bf16 %v1085_v53, %v1077_v51  ;;  %v927_v62 = vpop.f32.mrb[21].mxu0  ;;  %v926_v7 = vadd.f32 %v925_v58, %v3393_v34 }
 0x162   :  { %v2543_v61 = vpack.c.bf16 %v1087_v54, %v1079_v52  ;;  %v1040_v63 = vpop.f32.mrb[21].mxu1  ;;  %v2525_v2 = vpack.c.bf16 %v1086_v57, %v1078_v55  ;;  %v1039_v30 = vadd.f32 %v1038_v59, %v3393_v34  ;;  %v928_v8 = vadd.f32 %v927_v62, %v3393_v34 }
 0x163   :  { %v2541_v6 = vpack.c.bf16 %v1088_v45, %v1080_v56  ;;  %v1041_v9 = vadd.f32 %v1040_v63, %v3393_v34  ;;  %v1093_v21 = vmax.f32 %v926_v7, 0.0 }
 0x164   :  { %v931_v10 = vpop.f32.mrb[22].mxu0  ;;  %2526 = vmatprep.subr.bf16.mxu0 %v2525_v2  ;;  %v1095_v22 = vmax.f32 %v1039_v30, 0.0  ;;  %v1094_v24 = vmax.f32 %v928_v8, 0.0 }
 0x165   :  { %v1044_v11 = vpop.f32.mrb[22].mxu1  ;;  %2542 = vmatprep.subr.bf16.mxu1 %v2541_v6  ;;  %v932_v12 = vadd.f32 %v931_v10, %v3405_v3  ;;  %v933_v14 = vpop.f32.mrb[23].mxu0  ;;  %2528 = vmatpush1.bf16.msra.mxu0 %v2527_v60  ;;  %v1096_v25 = vmax.f32 %v1041_v9, 0.0 }
 0x166   :  { %v1045_v13 = vadd.f32 %v1044_v11, %v3405_v3  ;;  %v1046_v15 = vpop.f32.mrb[23].mxu1  ;;  %2544 = vmatpush1.bf16.msra.mxu1 %v2543_v61  ;;  %v934_v17 = vadd.f32 %v933_v14, %v3405_v3 }
 0x167   :  { %v1047_v18 = vadd.f32 %v1046_v15, %v3405_v3  ;;  %v1101_v23 = vmax.f32 %v932_v12, 0.0 }
 0x168   :  { %v1103_v34 = vmax.f32 %v1045_v13, 0.0  ;;  %v1102_v26 = vmax.f32 %v934_v17, 0.0  ;;  %v937_v28 = vpop.f32.mrb[24].mxu0 }
 0x169   :  { %v1104_v27 = vmax.f32 %v1047_v18, 0.0  ;;  %v1050_v29 = vpop.f32.mrb[24].mxu1  ;;  %v2531_v19 = vpack.c.bf16 %v1101_v23, %v1093_v21  ;;  %v939_v35 = vpop.f32.mrb[25].mxu0  ;;  %v938_v39 = vadd.f32 %v937_v28, %v3411_v20 }
 0x16a   :  { %v2547_v33 = vpack.c.bf16 %v1103_v34, %v1095_v22  ;;  %v1052_v36 = vpop.f32.mrb[25].mxu1  ;;  %v2529_v37 = vpack.c.bf16 %v1102_v26, %v1094_v24  ;;  %v1051_v3 = vadd.f32 %v1050_v29, %v3411_v20  ;;  %v940_v40 = vadd.f32 %v939_v35, %v3411_v20 }
 0x16b   :  { %v2545_v38 = vpack.c.bf16 %v1104_v27, %v1096_v25  ;;  %v1053_v41 = vadd.f32 %v1052_v36, %v3411_v20  ;;  %v1109_v52 = vmax.f32 %v938_v39, 0.0 }
 0x16c   :  { %v943_v42 = vpop.f32.mrb[26].mxu0  ;;  %2530 = vmatprep.subr.bf16.mxu0 %v2529_v37  ;;  %v1111_v53 = vmax.f32 %v1051_v3, 0.0  ;;  %v1110_v55 = vmax.f32 %v940_v40, 0.0 }
 0x16d   :  { %v1056_v43 = vpop.f32.mrb[26].mxu1  ;;  %2546 = vmatprep.subr.bf16.mxu1 %v2545_v38  ;;  %v944_v44 = vadd.f32 %v943_v42, %v3415_v32  ;;  %v945_v47 = vpop.f32.mrb[27].mxu0  ;;  %2532 = vmatpush1.bf16.msra.mxu0 %v2531_v19  ;;  %v1112_v56 = vmax.f32 %v1053_v41, 0.0 }
 0x16e   :  { %v1057_v46 = vadd.f32 %v1056_v43, %v3415_v32  ;;  %v1058_v48 = vpop.f32.mrb[27].mxu1  ;;  %2548 = vmatpush1.bf16.msra.mxu1 %v2547_v33  ;;  %v946_v50 = vadd.f32 %v945_v47, %v3415_v32  ;;  %v3535_v33 = vpop.permute.xlu0 %1147 }
 0x16f   :  { %v1059_v51 = vadd.f32 %v1058_v48, %v3415_v32  ;;  %v1117_v54 = vmax.f32 %v944_v44, 0.0 }
 0x170   :  { %v1119_v20 = vmax.f32 %v1057_v46, 0.0  ;;  %v1118_v57 = vmax.f32 %v946_v50, 0.0  ;;  %v949_v58 = vpop.f32.mrb[28].mxu0 }
 0x171   :  { %v1120_v45 = vmax.f32 %v1059_v51, 0.0  ;;  %v1062_v59 = vpop.f32.mrb[28].mxu1  ;;  %v2535_v60 = vpack.c.bf16 %v1117_v54, %v1109_v52  ;;  %v951_v62 = vpop.f32.mrb[29].mxu0  ;;  %v950_v7 = vadd.f32 %v949_v58, %v3423_v49 }
 0x172   :  { %v2551_v61 = vpack.c.bf16 %v1119_v20, %v1111_v53  ;;  %v1064_v63 = vpop.f32.mrb[29].mxu1  ;;  %v2533_v2 = vpack.c.bf16 %v1118_v57, %v1110_v55  ;;  %v1063_v32 = vadd.f32 %v1062_v59, %v3423_v49  ;;  %v952_v30 = vadd.f32 %v951_v62, %v3423_v49  ;;  %v3547_v59 = vpop.permute.xlu0 %1157 }
 0x173   :  { %v2549_v6 = vpack.c.bf16 %v1120_v45, %v1112_v56  ;;  %v1065_v8 = vadd.f32 %v1064_v63, %v3423_v49  ;;  %v1125_v18 = vmax.f32 %v950_v7, 0.0 }
 0x174   :  { %v955_v9 = vpop.f32.mrb[30].mxu0  ;;  %2534 = vmatprep.subr.bf16.mxu0 %v2533_v2  ;;  %v1127_v21 = vmax.f32 %v1063_v32, 0.0  ;;  %v1126_v23 = vmax.f32 %v952_v30, 0.0 }
 0x175   :  { %v1068_v10 = vpop.f32.mrb[30].mxu1  ;;  %2550 = vmatprep.subr.bf16.mxu1 %v2549_v6  ;;  %v956_v11 = vadd.f32 %v955_v9, %v3427_v0  ;;  %v957_v13 = vpop.f32.mrb[31].mxu0  ;;  %2536 = vmatpush1.bf16.msra.mxu0 %v2535_v60  ;;  %v1128_v34 = vmax.f32 %v1065_v8, 0.0 }
 0x176   :  { %v1069_v12 = vadd.f32 %v1068_v10, %v3427_v0  ;;  %v1070_v14 = vpop.f32.mrb[31].mxu1  ;;  %2552 = vmatpush1.bf16.msra.mxu1 %v2551_v61  ;;  %v958_v15 = vadd.f32 %v957_v13, %v3427_v0 }
 0x177   :  { %v1071_v17 = vadd.f32 %v1070_v14, %v3427_v0  ;;  %v1133_v22 = vmax.f32 %v956_v11, 0.0 }
 0x178   :  { %v1135_v49 = vmax.f32 %v1069_v12, 0.0  ;;  %v1134_v24 = vmax.f32 %v958_v15, 0.0 }
 0x179   :  { %v1136_v25 = vmax.f32 %v1071_v17, 0.0  ;;  %v2539_v26 = vpack.c.bf16 %v1133_v22, %v1125_v18 }
 0x17a   :  { %v2555_v27 = vpack.c.bf16 %v1135_v49, %v1127_v21  ;;  %v2537_v28 = vpack.c.bf16 %v1134_v24, %v1126_v23 }
 0x17b   :  { %v2553_v29 = vpack.c.bf16 %v1136_v25, %v1128_v34 }
 0x17c   :  { %2538 = vmatprep.subr.bf16.mxu0 %v2537_v28 }
 0x17d   :  { %2554 = vmatprep.subr.bf16.mxu1 %v2553_v29  ;;  %2540 = vmatpush1.bf16.msra.mxu0 %v2539_v26 }
 0x17e   :  { %2556 = vmatpush1.bf16.msra.mxu1 %v2555_v27  ;;  %v3562_v27 = vld [vmem:[%s3610_s5] sm:$0x1] }
 0x180   :  { %2097 = vmatmul.mubr.msk.f32.vlgmr.msra.gmra.mrb[40].mxu0 %vm1165_vm2, %v3438_v31 }
 0x181   :  { %2101 = vmatmul.mubr.msk.f32.vlgmr.msra.gmra.mrb[40].mxu1 %vm1165_vm2, %v3438_v31  ;;  %1426 = vmatprep.mubr.f32.mxu0 %v2620_v4 }
 0x182   :  { %1515 = vmatprep.mubr.f32.mxu1 %v2620_v4 }
 0x184   :  { %2098 = vmatmul.mubr.msk.f32.gmra.mrb[42].mxu0 %vm1165_vm2, %v3449_v1 }
 0x185   :  { %2102 = vmatmul.mubr.msk.f32.gmra.mrb[42].mxu1 %vm1165_vm2, %v3449_v1  ;;  %1432 = vmatprep.mubr.f32.mxu0 %v2620_v4 }
 0x186   :  { %1521 = vmatprep.mubr.f32.mxu1 %v2620_v4 }
 0x188   :  { %2099 = vmatmul.mubr.msk.f32.gmra.mrb[44].mxu0 %vm1165_vm2, %v3460_v5 }
 0x189   :  { %2103 = vmatmul.mubr.msk.f32.gmra.mrb[44].mxu1 %vm1165_vm2, %v3460_v5  ;;  %1438 = vmatprep.mubr.f32.mxu0 %v2620_v4  ;;  %v3537_v5 = vpop.permute.xlu1 %1152 }
 0x18a   :  { %1527 = vmatprep.mubr.f32.mxu1 %v2620_v4 }
 0x18c   :  { %2100 = vmatmul.mubr.msk.f32.gmra.mrb[46].mxu0 %vm1165_vm2, %v3471_v16 }
 0x18d   :  { %2104 = vmatmul.mubr.msk.f32.gmra.mrb[46].mxu1 %vm1165_vm2, %v3471_v16  ;;  %1636 = vmatprep.mubr.f32.mxu0 %v2620_v4  ;;  %v3549_v62 = vpop.permute.xlu1 %1162 }
 0x18e   :  { %1707 = vmatprep.mubr.f32.mxu1 %v2620_v4 }
 0x213   :  { %v1244_v0 = vpop.f32.mrb[32].mxu0 }
 0x214   :  { %v1333_v31 = vpop.f32.mrb[32].mxu1  ;;  %v1246_v1 = vpop.f32.mrb[33].mxu0  ;;  %v1245_v35 = vadd.f32 %v1244_v0, %v3535_v33 }
 0x215   :  { %v1335_v19 = vpop.f32.mrb[33].mxu1  ;;  %v1334_v36 = vadd.f32 %v1333_v31, %v3535_v33  ;;  %v1247_v37 = vadd.f32 %v1246_v1, %v3535_v33 }
 0x216   :  { %v1336_v16 = vadd.f32 %v1335_v19, %v3535_v33  ;;  %v1534_v46 = vmax.f32 %v1245_v35, 0.0 }
 0x217   :  { %v1250_v38 = vpop.f32.mrb[34].mxu0  ;;  %v1536_v47 = vmax.f32 %v1334_v36, 0.0  ;;  %v1535_v51 = vmax.f32 %v1247_v37, 0.0 }
 0x218   :  { %v1339_v39 = vpop.f32.mrb[34].mxu1  ;;  %v1251_v3 = vadd.f32 %v1250_v38, %v3537_v5  ;;  %v1252_v41 = vpop.f32.mrb[35].mxu0  ;;  %v1537_v52 = vmax.f32 %v1336_v16, 0.0 }
 0x219   :  { %v1340_v40 = vadd.f32 %v1339_v39, %v3537_v5  ;;  %v1341_v42 = vpop.f32.mrb[35].mxu1  ;;  %v1253_v43 = vadd.f32 %v1252_v41, %v3537_v5 }
 0x21a   :  { %v1342_v44 = vadd.f32 %v1341_v42, %v3537_v5  ;;  %v1542_v48 = vmax.f32 %v1251_v3, 0.0 }
 0x21b   :  { %v1544_v50 = vmax.f32 %v1340_v40, 0.0  ;;  %v1543_v53 = vmax.f32 %v1253_v43, 0.0  ;;  %v1256_v20 = vpop.f32.mrb[36].mxu0 }
 0x21c   :  { %v1545_v54 = vmax.f32 %v1342_v44, 0.0  ;;  %v1345_v55 = vpop.f32.mrb[36].mxu1  ;;  %v2559_v56 = vpack.c.bf16 %v1542_v48, %v1534_v46  ;;  %v1258_v45 = vpop.f32.mrb[37].mxu0  ;;  %v1257_v63 = vadd.f32 %v1256_v20, %v3547_v59 }
 0x21d   :  { %v2567_v57 = vpack.c.bf16 %v1544_v50, %v1536_v47  ;;  %v1347_v58 = vpop.f32.mrb[37].mxu1  ;;  %v2557_v60 = vpack.c.bf16 %v1543_v53, %v1535_v51  ;;  %v1346_v2 = vadd.f32 %v1345_v55, %v3547_v59  ;;  %v1259_v6 = vadd.f32 %v1258_v45, %v3547_v59 }
 0x21e   :  { %v2565_v61 = vpack.c.bf16 %v1545_v54, %v1537_v52  ;;  %v1348_v7 = vadd.f32 %v1347_v58, %v3547_v59  ;;  %v1550_v14 = vmax.f32 %v1257_v63, 0.0 }
 0x21f   :  { %v1262_v32 = vpop.f32.mrb[38].mxu0  ;;  %2558 = vmatprep.subr.bf16.mxu0 %v2557_v60  ;;  %v1552_v15 = vmax.f32 %v1346_v2, 0.0  ;;  %v1551_v21 = vmax.f32 %v1259_v6, 0.0 }
 0x220   :  { %v1351_v30 = vpop.f32.mrb[38].mxu1  ;;  %2566 = vmatprep.subr.bf16.mxu1 %v2565_v61  ;;  %v1263_v8 = vadd.f32 %v1262_v32, %v3549_v62  ;;  %v1264_v10 = vpop.f32.mrb[39].mxu0  ;;  %2560 = vmatpush1.bf16.msra.mxu0 %v2559_v56  ;;  %v1553_v22 = vmax.f32 %v1348_v7, 0.0 }
 0x221   :  { %v1352_v9 = vadd.f32 %v1351_v30, %v3549_v62  ;;  %v1353_v11 = vpop.f32.mrb[39].mxu1  ;;  %2568 = vmatpush1.bf16.msra.mxu1 %v2567_v57  ;;  %v1265_v12 = vadd.f32 %v1264_v10, %v3549_v62 }
 0x222   :  { %v1354_v13 = vadd.f32 %v1353_v11, %v3549_v62  ;;  %v1558_v17 = vmax.f32 %v1263_v8, 0.0 }
 0x223   :  { %v1560_v18 = vmax.f32 %v1352_v9, 0.0  ;;  %v1559_v49 = vmax.f32 %v1265_v12, 0.0 }
 0x224   :  { %v1561_v23 = vmax.f32 %v1354_v13, 0.0  ;;  %v2563_v34 = vpack.c.bf16 %v1558_v17, %v1550_v14 }
 0x225   :  { %v2571_v24 = vpack.c.bf16 %v1560_v18, %v1552_v15  ;;  %v2561_v25 = vpack.c.bf16 %v1559_v49, %v1551_v21 }
 0x226   :  { %v2569_v26 = vpack.c.bf16 %v1561_v23, %v1553_v22  ;;  %v1871_v23 = vlaneseq }
 0x227   :  { %2562 = vmatprep.subr.bf16.mxu0 %v2561_v25 }
 0x228   :  { %2570 = vmatprep.subr.bf16.mxu1 %v2569_v26  ;;  %2564 = vmatpush1.bf16.msra.mxu0 %v2563_v34  ;;  %v1568_v34 = vstv %s3611_s6  ;;  %v1872_v25 = vshrl.u32 %v1871_v23, 7  ;;  %s2622_s6 = smov [#allocation3]  }
 0x229   :  { %2572 = vmatpush1.bf16.msra.mxu1 %v2571_v24  ;;  %s1921_s16 = sshll.u32 %s2622_s6, 4  ;;  %s1922_s16 = int_to_ptr.vmem [resolvable:$true] %s1921_s16 }
 0x22a   :  { %s2595_s17 = scalar_lea.vmem %s1922_s16, 128  ;;  %p2600_p1 = scmp.lt.s32.totalorder %s1922_s16, %s1922_s16 }
 0x22b   :  { %2105 = vmatmul.mubr.msk.f32.vlgmr.msra.gmra.mrb[48].mxu0 %vm212_vm0, %v3562_v27  ;;  %p2596_p0 = scmp.ne.s32.totalorder %s1922_s16, %s2595_s17  ;;  %p2601_p2 = scmp.lt.s32.totalorder %s2595_s17, %s2595_s17 }
 0x22c   :  { %2106 = vmatmul.mubr.msk.f32.vlgmr.msra.gmra.mrb[48].mxu1 %vm212_vm0, %v3562_v27  ;;  %1778 = vmatprep.mubr.f32.mxu0 %v2620_v4 }
 0x22d   :  { %1849 = vmatprep.mubr.f32.mxu1 %v2620_v4  ;;  %p2602_p3 = por %p2601_p2, %p2600_p1 }
 0x22f   :  { %p2603_p4 = pnand %p2602_p3, %p2596_p0 }
 0x253   :  { %v1422_v28 = vpop.f32.mrb[40].mxu0 }
 0x254   :  { %v1511_v29 = vpop.f32.mrb[40].mxu1  ;;  %v1424_v0 = vpop.f32.mrb[41].mxu0  ;;  %v1423_v1 = vadd.f32 %v1422_v28, %v3535_v33 }
 0x255   :  { %v1513_v31 = vpop.f32.mrb[41].mxu1  ;;  %v1512_v19 = vadd.f32 %v1511_v29, %v3535_v33  ;;  %v1425_v35 = vadd.f32 %v1424_v0, %v3535_v33 }
 0x256   :  { %v1514_v36 = vadd.f32 %v1513_v31, %v3535_v33  ;;  %v1538_v42 = vmax.f32 %v1423_v1, 0.0 }
 0x257   :  { %v1428_v37 = vpop.f32.mrb[42].mxu0  ;;  %v1540_v43 = vmax.f32 %v1512_v19, 0.0  ;;  %v1539_v47 = vmax.f32 %v1425_v35, 0.0 }
 0x258   :  { %v1517_v16 = vpop.f32.mrb[42].mxu1  ;;  %v1429_v38 = vadd.f32 %v1428_v37, %v3537_v5  ;;  %v1430_v3 = vpop.f32.mrb[43].mxu0  ;;  %v1541_v48 = vmax.f32 %v1514_v36, 0.0 }
 0x259   :  { %v1518_v39 = vadd.f32 %v1517_v16, %v3537_v5  ;;  %v1519_v4 = vpop.f32.mrb[43].mxu1  ;;  %v1431_v40 = vadd.f32 %v1430_v3, %v3537_v5 }
 0x25a   :  { %v1520_v41 = vadd.f32 %v1519_v4, %v3537_v5  ;;  %v1546_v44 = vmax.f32 %v1429_v38, 0.0 }
 0x25b   :  { %v1548_v46 = vmax.f32 %v1518_v39, 0.0  ;;  %v1547_v50 = vmax.f32 %v1431_v40, 0.0  ;;  %v1434_v51 = vpop.f32.mrb[44].mxu0 }
 0x25c   :  { %v1549_v33 = vmax.f32 %v1520_v41, 0.0  ;;  %v1523_v52 = vpop.f32.mrb[44].mxu1  ;;  %v2575_v53 = vpack.c.bf16 %v1546_v44, %v1538_v42  ;;  %v1436_v20 = vpop.f32.mrb[45].mxu0  ;;  %v1435_v45 = vadd.f32 %v1434_v51, %v3547_v59 }
 0x25d   :  { %v2583_v54 = vpack.c.bf16 %v1548_v46, %v1540_v43  ;;  %v1525_v55 = vpop.f32.mrb[45].mxu1  ;;  %v2573_v56 = vpack.c.bf16 %v1547_v50, %v1539_v47  ;;  %v1524_v5 = vadd.f32 %v1523_v52, %v3547_v59  ;;  %v1437_v58 = vadd.f32 %v1436_v20, %v3547_v59 }
 0x25e   :  { %v2581_v57 = vpack.c.bf16 %v1549_v33, %v1541_v48  ;;  %v1526_v60 = vadd.f32 %v1525_v55, %v3547_v59  ;;  %v1554_v9 = vmax.f32 %v1435_v45, 0.0 }
 0x25f   :  { %v1440_v61 = vpop.f32.mrb[46].mxu0  ;;  %2574 = vmatprep.subr.bf16.mxu0 %v2573_v56  ;;  %v1556_v10 = vmax.f32 %v1524_v5, 0.0  ;;  %v1555_v12 = vmax.f32 %v1437_v58, 0.0 }
 0x260   :  { %v1529_v63 = vpop.f32.mrb[46].mxu1  ;;  %2582 = vmatprep.subr.bf16.mxu1 %v2581_v57  ;;  %v1441_v2 = vadd.f32 %v1440_v61, %v3549_v62  ;;  %v1442_v7 = vpop.f32.mrb[47].mxu0  ;;  %2576 = vmatpush1.bf16.msra.mxu0 %v2575_v53  ;;  %v1557_v13 = vmax.f32 %v1526_v60, 0.0 }
 0x261   :  { %v1530_v6 = vadd.f32 %v1529_v63, %v3549_v62  ;;  %v1531_v32 = vpop.f32.mrb[47].mxu1  ;;  %2584 = vmatpush1.bf16.msra.mxu1 %v2583_v54  ;;  %v1443_v30 = vadd.f32 %v1442_v7, %v3549_v62 }
 0x262   :  { %v1532_v8 = vadd.f32 %v1531_v32, %v3549_v62  ;;  %v1562_v11 = vmax.f32 %v1441_v2, 0.0  ;;  %v2621_v62 = vmov 1966171168  }
 0x263   :  { %v1564_v59 = vmax.f32 %v1530_v6, 0.0  ;;  %v1563_v14 = vmax.f32 %v1443_v30, 0.0  ;;  %v1869_v49 = vunpack.c.l.s4 %v2621_v62 }
 0x264   :  { %v1565_v15 = vmax.f32 %v1532_v8, 0.0  ;;  %v2579_v17 = vpack.c.bf16 %v1562_v11, %v1554_v9 }
 0x265   :  { %v2587_v18 = vpack.c.bf16 %v1564_v59, %v1556_v10  ;;  %v2577_v21 = vpack.c.bf16 %v1563_v14, %v1555_v12  ;;  %v1870_v24 = vunpack.c.0.s8 %v1869_v49 }
 0x266   :  { %v2585_v22 = vpack.c.bf16 %v1565_v15, %v1557_v13 }
 0x267   :  { %2578 = vmatprep.subr.bf16.mxu0 %v2577_v21  ;;  %v1873_v35 = vsub.s32 %v1870_v24, %v1872_v25 }
 0x268   :  { %2586 = vmatprep.subr.bf16.mxu1 %v2585_v22  ;;  %2580 = vmatpush1.bf16.msra.mxu0 %v2579_v17 }
 0x269   :  { %2588 = vmatpush1.bf16.msra.mxu1 %v2587_v18 }
 0x26b   :  { %2107 = vmatmul.mubr.msk.f32.vlgmr.msra.gmra.mrb[50].mxu0 %vm212_vm0, %v3562_v27 }
 0x26c   :  { %2108 = vmatmul.mubr.msk.f32.vlgmr.msra.gmra.mrb[50].mxu1 %vm212_vm0, %v3562_v27 }
 0x2fe   :  { %v1638_v26 = vpop.f32.mrb[48].mxu0 }
 0x2ff   :  { %v1709_v28 = vpop.f32.mrb[48].mxu1  ;;  %v1639_v29 = vadd.f32 %v1638_v26, %v1568_v34  ;;  %v1640_v31 = vpop.f32.mrb[49].mxu0 }
 0x300   :  { %v1710_v0 = vadd.f32 %v1709_v28, %v1568_v34  ;;  %v1711_v1 = vpop.f32.mrb[49].mxu1  ;;  %v1641_v19 = vadd.f32 %v1640_v31, %v1568_v34 }
 0x301   :  { %v1712_v36 = vadd.f32 %v1711_v1, %v1568_v34 }
 0x302   :  { %v1864_v37 = vcombine.low %v1639_v29, %v1641_v19 }
 0x303   :  { %v1865_v27 = vcombine.low %v1710_v0, %v1712_v36 }
 0x304   :  { %v1874_v16 = vrot.slane %v1864_v37, %v1873_v35 }
 0x305   :  { %v1881_v38 = vrot.slane %v1865_v27, %v1873_v35 }
 0x307   :  { %v1896_v39 = vcombine.low %v1874_v16, %v1881_v38 }
 0x309   :  { %v1904_v52 = vrot.slane %v1896_v39, %v1873_v35 }
 0x33e   :  { %v1780_v3 = vpop.f32.mrb[50].mxu0 }
 0x33f   :  { %v1851_v4 = vpop.f32.mrb[50].mxu1  ;;  %v1781_v40 = vadd.f32 %v1780_v3, %v1568_v34  ;;  %v1782_v42 = vpop.f32.mrb[51].mxu0 }
 0x340   :  { %v1852_v41 = vadd.f32 %v1851_v4, %v1568_v34  ;;  %v1853_v43 = vpop.f32.mrb[51].mxu1  ;;  %v1783_v44 = vadd.f32 %v1782_v42, %v1568_v34 }
 0x341   :  { %v1854_v46 = vadd.f32 %v1853_v43, %v1568_v34 }
 0x342   :  { %v1866_v47 = vcombine.low %v1781_v40, %v1783_v44 }
 0x343   :  { %v1867_v48 = vcombine.low %v1852_v41, %v1854_v46 }
 0x344   :  { %v1888_v50 = vrot.slane %v1866_v47, %v1873_v35 }
 0x345   :  { %v1895_v33 = vrot.slane %v1867_v48, %v1873_v35 }
 0x347   :  { %v1897_v51 = vcombine.low %v1888_v50, %v1895_v33 }
 0x349   :  { %v1911_v53 = vrot.slane %v1897_v51, %v1873_v35 }
 0x34b   :  { %v1912_v54 = vcombine.low %v1904_v52, %v1911_v53 }
 0x34d   :  { %1914 = vst [vmem:[#allocation3] sm:$0xff] %v1912_v54 }
 0x34e   :  { %2606 = shalt.err (!%p2603_p4)
}
 0x34f   :  { %s2607_s19 = scalar_lea.hbm %s3612_s7, 128 }
 0x350   :  { %p2608_p5 = scmp.ne.s32.totalorder %s3612_s7, %s2607_s19  ;;  %p2611_p6 = scmp.lt.u32.totalorder %s2607_s19, %s3612_s7 }
 0x352   :  { %p2613_p7 = pnand %p2611_p6, %p2608_p5 }
 0x354   :  { %2616 = shalt.err (!%p2613_p7)
}
 0x355   :  { %1924 = dma.vmem_to_hbm [thread:$0]  %s1922_s16, 128, %s3612_s7, [#allocation4]  }
 0x356   :  { %2617 = dma.done.wait [#allocation4], 128  }
 0x357   :  { %2618 = vsyncadd [#allocation4], 4294967168 }
 0x358   :  { %1928 = vsyncpa [#allocation4], 1 }

</bundles_post_ra>
